<compile_context>
chip_gen: v5e
topology: v5e:2x2
jax: 0.10.0
libtpu: 0.0.40
codegen_flags: <defaults>
</compile_context>

<pallas_src>
import functools

import numpy as np
import jax
import jax.numpy as jnp
from jax.experimental import pallas as pl
from jax.experimental.pallas import tpu as pltpu


# --------------------------------------------------------------------------- #
# Pallas kernel: Tb timesteps of one LSTM layer per grid step.
# Inputs : gx_ref  (Tb, 4, B, H) f32   precomputed x@W_ih^T + b, per gate
#          len_ref (B, 1)        i32   sequence lengths (loaded once)
#          whh_ref (4, H, H)     bf16  recurrent weights, per gate, transposed
# Output : y_ref   (Tb, B, H)    f32
# Scratch: h_scr, c_scr (B, H)   f32   recurrent state carried across grid steps
# --------------------------------------------------------------------------- #
def _lstm_layer_kernel(gx_ref, len_ref, whh_ref, y_ref, h_scr, c_scr, *, tb):
    step = pl.program_id(0)

    @pl.when(step == 0)
    def _():
        h_scr[...] = jnp.zeros_like(h_scr)
        c_scr[...] = jnp.zeros_like(c_scr)

    lengths = len_ref[...]                 # (B, 1) int32
    t_base = step * tb                     # global index of first timestep in block

    # Hoist constant weight loads out of the unrolled time loop.
    w_i = whh_ref[0]
    w_f = whh_ref[1]
    w_g = whh_ref[2]
    w_o = whh_ref[3]

    h = h_scr[...]
    c = c_scr[...]

    for lt in range(tb):                   # static, fully unrolled
        gxt = gx_ref[lt]                   # (4, B, H) f32
        hb = h.astype(jnp.bfloat16)

        # Per-gate dots: each (B,H) result is lane-aligned (no 4H slicing).
        zi = gxt[0] + jnp.dot(hb, w_i, preferred_element_type=jnp.float32)
        zf = gxt[1] + jnp.dot(hb, w_f, preferred_element_type=jnp.float32)
        zg = gxt[2] + jnp.dot(hb, w_g, preferred_element_type=jnp.float32)
        zo = gxt[3] + jnp.dot(hb, w_o, preferred_element_type=jnp.float32)

        i_g = jax.nn.sigmoid(zi)
        f_g = jax.nn.sigmoid(zf)
        g_g = jnp.tanh(zg)
        o_g = jax.nn.sigmoid(zo)

        c_new = f_g * c + i_g * g_g
        h_new = o_g * jnp.tanh(c_new)

        # pack/pad semantics: freeze state and zero output on padded steps.
        valid = lengths > (t_base + lt)    # (B, 1) bool, broadcasts over H
        h = jnp.where(valid, h_new, h)
        c = jnp.where(valid, c_new, c)
        y_ref[lt] = jnp.where(valid, h_new, jnp.zeros_like(h_new))

    h_scr[...] = h
    c_scr[...] = c


def lstm_layer_time_major(x_tm, lengths, wih_r, whh_r, bias_r, *, tb=8):
    """One LSTM layer, time-major. x_tm: (T, B, D) f32 -> (T, B, H) f32."""
    T, B, _ = x_tm.shape
    H = whh_r.shape[-1]

    # Hoisted input projection: one big GEMM over all timesteps (bf16 ops, f32 acc).
    gx = jnp.einsum(
        "tbd,dgh->tgbh",
        x_tm.astype(jnp.bfloat16),
        wih_r,
        preferred_element_type=jnp.float32,
    ) + bias_r.reshape(1, 4, 1, H)                              # (T, 4, B, H) f32

    tb = max(1, min(tb, T))
    n_blk = (T + tb - 1) // tb
    Tp = n_blk * tb
    if Tp != T:                                                  # pad time to block multiple
        gx = jnp.pad(gx, ((0, Tp - T), (0, 0), (0, 0), (0, 0)))

    len_col = lengths.reshape(B, 1).astype(jnp.int32)

    y = pl.pallas_call(
        functools.partial(_lstm_layer_kernel, tb=tb),
        out_shape=jax.ShapeDtypeStruct((Tp, B, H), jnp.float32),
        grid_spec=pltpu.PrefetchScalarGridSpec(
            num_scalar_prefetch=0,
            grid=(n_blk,),
            in_specs=[
                pl.BlockSpec((tb, 4, B, H), lambda s: (s, 0, 0, 0)),  # gates_x block
                pl.BlockSpec((B, 1), lambda s: (0, 0)),               # lengths (resident)
                pl.BlockSpec((4, H, H), lambda s: (0, 0, 0)),         # W_hh^T (resident)
            ],
            out_specs=pl.BlockSpec((tb, B, H), lambda s: (s, 0, 0)),
            scratch_shapes=[
                pltpu.VMEM((B, H), jnp.float32),                      # h state
                pltpu.VMEM((B, H), jnp.float32),                      # c state
            ],
        ),
        compiler_params=pltpu.CompilerParams(
            dimension_semantics=("arbitrary",),                       # time recurrence
        ),
    )(gx, len_col, whh_r)

    return y[:T]


# --------------------------------------------------------------------------- #
# LSTMKB module equivalent
# --------------------------------------------------------------------------- #
def init_lstmkb_params(key, input_dim, hidden_dims):
    """PyTorch nn.LSTM-style uniform(-1/sqrt(H), 1/sqrt(H)) init, reorganized for TPU:
       wih_r: (D, 4, H) bf16, whh_r: (4, H, H) bf16, bias_r: (4, H) f32 (b_ih + b_hh)."""
    params = []
    d_in = input_dim
    for h in hidden_dims:
        key, k1, k2, k3, k4 = jax.random.split(key, 5)
        bound = 1.0 / np.sqrt(h)
        w_ih = jax.random.uniform(k1, (4 * h, d_in), jnp.float32, -bound, bound)
        w_hh = jax.random.uniform(k2, (4 * h, h), jnp.float32, -bound, bound)
        b_ih = jax.random.uniform(k3, (4 * h,), jnp.float32, -bound, bound)
        b_hh = jax.random.uniform(k4, (4 * h,), jnp.float32, -bound, bound)

        wih_r = jnp.transpose(w_ih.reshape(4, h, d_in), (2, 0, 1)).astype(jnp.bfloat16)
        whh_r = jnp.transpose(w_hh.reshape(4, h, h), (0, 2, 1)).astype(jnp.bfloat16)
        bias_r = (b_ih + b_hh).reshape(4, h).astype(jnp.float32)
        params.append((wih_r, whh_r, bias_r))
        d_in = h
    return params


def lstmkb_forward(params, x, lengths_np, masks=None, *, tb=8):
    """Mirror of LSTMKB.forward.

    x: (B, T, input_dim); lengths_np: host-side int lengths; masks: optional list
    of (B, H_i). Returns x[:, max(lengths)-1, :] (pad_packed_sequence pads only up
    to the longest sequence in the batch, and the module takes x[:, -1, :])."""
    lengths = jnp.asarray(lengths_np, dtype=jnp.int32)
    x_tm = jnp.transpose(x.astype(jnp.float32), (1, 0, 2))        # time-major once
    for i, (wih_r, whh_r, bias_r) in enumerate(params):
        x_tm = lstm_layer_time_major(x_tm, lengths, wih_r, whh_r, bias_r, tb=tb)
        if masks is not None:
            x_tm = x_tm * masks[i][None, :, :]                    # masks[i].unsqueeze(1)
    t_last = int(np.max(np.asarray(lengths_np))) - 1
    return x_tm[t_last]                                           # (B, H_last)


# --------------------------------------------------------------------------- #
# Pure-JAX reference (same bf16/f32 numerics) for correctness check
# --------------------------------------------------------------------------- #
def _ref_layer_tm(x_tm, lengths, wih_r, whh_r, bias_r):
    T, B, _ = x_tm.shape
    H = whh_r.shape[-1]
    gx = jnp.einsum(
        "tbd,dgh->tgbh",
        x_tm.astype(jnp.bfloat16),
        wih_r,
        preferred_element_type=jnp.float32,
    ) + bias_r.reshape(1, 4, 1, H)
    valid = jnp.arange(T)[:, None, None] < lengths[None, :, None]   # (T, B, 1)

    def step(carry, inp):
        h, c = carry
        gxt, m = inp                                                # (4,B,H), (B,1)
        hb = h.astype(jnp.bfloat16)
        z = gxt + jnp.einsum("bk,gkh->gbh", hb, whh_r,
                             preferred_element_type=jnp.float32)
        i = jax.nn.sigmoid(z[0]); f = jax.nn.sigmoid(z[1])
        g = jnp.tanh(z[2]);       o = jax.nn.sigmoid(z[3])
        c_new = f * c + i * g
        h_new = o * jnp.tanh(c_new)
        return (jnp.where(m, h_new, h), jnp.where(m, c_new, c)), jnp.where(m, h_new, 0.0)

    init = (jnp.zeros((B, H), jnp.float32), jnp.zeros((B, H), jnp.float32))
    (_, _), ys = jax.lax.scan(step, init, (gx, valid))
    return ys


def _ref_forward(params, x, lengths_np, masks=None):
    lengths = jnp.asarray(lengths_np, dtype=jnp.int32)
    x_tm = jnp.transpose(x.astype(jnp.float32), (1, 0, 2))
    for i, (wih_r, whh_r, bias_r) in enumerate(params):
        x_tm = _ref_layer_tm(x_tm, lengths, wih_r, whh_r, bias_r)
        if masks is not None:
            x_tm = x_tm * masks[i][None, :, :]
    return x_tm[int(np.max(np.asarray(lengths_np))) - 1]


# --------------------------------------------------------------------------- #
if __name__ == "__main__":
    B, T, INPUT_DIM = 2, 8, 16
    HIDDEN_DIMS = [32, 32]

    key = jax.random.PRNGKey(0)
    k_param, k_x = jax.random.split(key)

    params = init_lstmkb_params(k_param, INPUT_DIM, HIDDEN_DIMS)
    x = jax.random.normal(k_x, (B, T, INPUT_DIM), dtype=jnp.float32)
    lengths = np.array([8, 5], dtype=np.int32)   # variable-length sequences

    out = jax.block_until_ready(lstmkb_forward(params, x, lengths, masks=None))
    ref = jax.block_until_ready(_ref_forward(params, x, lengths, masks=None))

    np.testing.assert_allclose(np.asarray(out), np.asarray(ref), rtol=5e-3, atol=5e-3)
    assert out.shape == (B, HIDDEN_DIMS[-1])
    print("KERNEL_OK")
</pallas_src>

<mosaic_0001>
module attributes {stable_mosaic.version = 11 : i64} {
  func.func @_lstm_layer_kernel(%arg0: i32, %arg1: memref<8x4x2x32xf32, #tpu.memory_space<vmem>>, %arg2: memref<2x1xi32, #tpu.memory_space<vmem>>, %arg3: memref<4x32x32xbf16, #tpu.memory_space<vmem>>, %arg4: memref<8x2x32xf32, #tpu.memory_space<vmem>>, %arg5: memref<2x32xf32, #tpu.memory_space<vmem>>, %arg6: memref<2x32xf32, #tpu.memory_space<vmem>>) attributes {dimension_semantics = [#tpu.dimension_semantics<arbitrary>], iteration_bounds = array<i64: 1>, scalar_prefetch = 0 : i64, scratch_operands = 2 : i64, tpu.core_type = #tpu.core_type<tc>, window_params = [{transform_indices = @transform_0, window_bounds = array<i64: 8, 4, 2, 32>}, {pipeline_mode = #tpu.pipeline_mode<synchronous>, transform_indices = @transform_1, window_bounds = array<i64: 2, 1>}, {pipeline_mode = #tpu.pipeline_mode<synchronous>, transform_indices = @transform_2, window_bounds = array<i64: 4, 32, 32>}, {transform_indices = @transform_3, window_bounds = array<i64: 8, 2, 32>}]} {
    %c0_i32 = arith.constant 0 : i32
    %0 = arith.cmpi eq, %arg0, %c0_i32 : i32
    %1 = arith.extui %0 : i1 to i32
    %c0_i32_0 = arith.constant 0 : i32
    %2 = arith.cmpi ne, %1, %c0_i32_0 : i32
    scf.if %2 {
      %cst_135 = arith.constant 0.000000e+00 : f32
      %465 = vector.broadcast %cst_135 : f32 to vector<2x32xf32>
      %c0_136 = arith.constant 0 : index
      %c0_137 = arith.constant 0 : index
      %466 = vector.load %arg5[%c0_136, %c0_137] : memref<2x32xf32, #tpu.memory_space<vmem>>, vector<2x32xf32>
      tpu.vector_store %arg5[%c0_136, %c0_137], %465 {strides = array<i32>} : memref<2x32xf32, #tpu.memory_space<vmem>>, vector<2x32xf32>,
      %cst_138 = arith.constant 0.000000e+00 : f32
      %467 = vector.broadcast %cst_138 : f32 to vector<2x32xf32>
      %c0_139 = arith.constant 0 : index
      %c0_140 = arith.constant 0 : index
      %468 = vector.load %arg6[%c0_139, %c0_140] : memref<2x32xf32, #tpu.memory_space<vmem>>, vector<2x32xf32>
      tpu.vector_store %arg6[%c0_139, %c0_140], %467 {strides = array<i32>} : memref<2x32xf32, #tpu.memory_space<vmem>>, vector<2x32xf32>,
    } else {
    }
    %c0 = arith.constant 0 : index
    %c0_1 = arith.constant 0 : index
    %3 = vector.load %arg2[%c0, %c0_1] : memref<2x1xi32, #tpu.memory_space<vmem>>, vector<2x1xi32>
    %c8_i32 = arith.constant 8 : i32
    %4 = arith.muli %arg0, %c8_i32 : i32
    %c0_2 = arith.constant 0 : index
    %c0_3 = arith.constant 0 : index
    %c0_4 = arith.constant 0 : index
    %5 = vector.load %arg3[%c0_2, %c0_3, %c0_4] : memref<4x32x32xbf16, #tpu.memory_space<vmem>>, vector<1x32x32xbf16>
    %6 = vector.shape_cast %5 : vector<1x32x32xbf16> to vector<32x32xbf16>
    %c1 = arith.constant 1 : index
    %c0_5 = arith.constant 0 : index
    %c0_6 = arith.constant 0 : index
    %7 = vector.load %arg3[%c1, %c0_5, %c0_6] : memref<4x32x32xbf16, #tpu.memory_space<vmem>>, vector<1x32x32xbf16>
    %8 = vector.shape_cast %7 : vector<1x32x32xbf16> to vector<32x32xbf16>
    %c2 = arith.constant 2 : index
    %c0_7 = arith.constant 0 : index
    %c0_8 = arith.constant 0 : index
    %9 = vector.load %arg3[%c2, %c0_7, %c0_8] : memref<4x32x32xbf16, #tpu.memory_space<vmem>>, vector<1x32x32xbf16>
    %10 = vector.shape_cast %9 : vector<1x32x32xbf16> to vector<32x32xbf16>
    %c3 = arith.constant 3 : index
    %c0_9 = arith.constant 0 : index
    %c0_10 = arith.constant 0 : index
    %11 = vector.load %arg3[%c3, %c0_9, %c0_10] : memref<4x32x32xbf16, #tpu.memory_space<vmem>>, vector<1x32x32xbf16>
    %12 = vector.shape_cast %11 : vector<1x32x32xbf16> to vector<32x32xbf16>
    %c0_11 = arith.constant 0 : index
    %c0_12 = arith.constant 0 : index
    %13 = vector.load %arg5[%c0_11, %c0_12] : memref<2x32xf32, #tpu.memory_space<vmem>>, vector<2x32xf32>
    %c0_13 = arith.constant 0 : index
    %c0_14 = arith.constant 0 : index
    %14 = vector.load %arg6[%c0_13, %c0_14] : memref<2x32xf32, #tpu.memory_space<vmem>>, vector<2x32xf32>
    %c0_15 = arith.constant 0 : index
    %c0_16 = arith.constant 0 : index
    %c0_17 = arith.constant 0 : index
    %c0_18 = arith.constant 0 : index
    %15 = vector.load %arg1[%c0_15, %c0_16, %c0_17, %c0_18] : memref<8x4x2x32xf32, #tpu.memory_space<vmem>>, vector<1x4x2x32xf32>
    %16 = vector.shape_cast %15 : vector<1x4x2x32xf32> to vector<4x2x32xf32>
    %17 = arith.truncf %13 : vector<2x32xf32> to vector<2x32xbf16>
    %18 = vector.extract_strided_slice %16 {offsets = [0, 0, 0], sizes = [1, 2, 32], strides = [1, 1, 1]} : vector<4x2x32xf32> to vector<1x2x32xf32>
    %19 = vector.shape_cast %18 : vector<1x2x32xf32> to vector<2x32xf32>
    %cst = arith.constant dense<0.000000e+00> : vector<2x32xf32>
    %20 = tpu.matmul %17, %6, %cst {dimension_numbers = #tpu.dot_dimension_numbers<[1], [0], [0], [1], [0, 0, 1, 1], [], []>} : vector<2x32xbf16>, vector<32x32xbf16>, vector<2x32xf32> -> vector<2x32xf32>
    %21 = arith.addf %19, %20 : vector<2x32xf32>
    %22 = vector.extract_strided_slice %16 {offsets = [1, 0, 0], sizes = [1, 2, 32], strides = [1, 1, 1]} : vector<4x2x32xf32> to vector<1x2x32xf32>
    %23 = vector.shape_cast %22 : vector<1x2x32xf32> to vector<2x32xf32>
    %cst_19 = arith.constant dense<0.000000e+00> : vector<2x32xf32>
    %24 = tpu.matmul %17, %8, %cst_19 {dimension_numbers = #tpu.dot_dimension_numbers<[1], [0], [0], [1], [0, 0, 1, 1], [], []>} : vector<2x32xbf16>, vector<32x32xbf16>, vector<2x32xf32> -> vector<2x32xf32>
    %25 = arith.addf %23, %24 : vector<2x32xf32>
    %26 = vector.extract_strided_slice %16 {offsets = [2, 0, 0], sizes = [1, 2, 32], strides = [1, 1, 1]} : vector<4x2x32xf32> to vector<1x2x32xf32>
    %27 = vector.shape_cast %26 : vector<1x2x32xf32> to vector<2x32xf32>
    %cst_20 = arith.constant dense<0.000000e+00> : vector<2x32xf32>
    %28 = tpu.matmul %17, %10, %cst_20 {dimension_numbers = #tpu.dot_dimension_numbers<[1], [0], [0], [1], [0, 0, 1, 1], [], []>} : vector<2x32xbf16>, vector<32x32xbf16>, vector<2x32xf32> -> vector<2x32xf32>
    %29 = arith.addf %27, %28 : vector<2x32xf32>
    %30 = vector.extract_strided_slice %16 {offsets = [3, 0, 0], sizes = [1, 2, 32], strides = [1, 1, 1]} : vector<4x2x32xf32> to vector<1x2x32xf32>
    %31 = vector.shape_cast %30 : vector<1x2x32xf32> to vector<2x32xf32>
    %cst_21 = arith.constant dense<0.000000e+00> : vector<2x32xf32>
    %32 = tpu.matmul %17, %12, %cst_21 {dimension_numbers = #tpu.dot_dimension_numbers<[1], [0], [0], [1], [0, 0, 1, 1], [], []>} : vector<2x32xbf16>, vector<32x32xbf16>, vector<2x32xf32> -> vector<2x32xf32>
    %33 = arith.addf %31, %32 : vector<2x32xf32>
    %34 = arith.negf %21 : vector<2x32xf32>
    %35 = math.exp %34 : vector<2x32xf32>
    %cst_22 = arith.constant 1.000000e+00 : f32
    %36 = vector.broadcast %cst_22 : f32 to vector<2x32xf32>
    %37 = arith.addf %36, %35 : vector<2x32xf32>
    %38 = arith.divf %36, %37 : vector<2x32xf32>
    %39 = arith.negf %25 : vector<2x32xf32>
    %40 = math.exp %39 : vector<2x32xf32>
    %cst_23 = arith.constant 1.000000e+00 : f32
    %41 = vector.broadcast %cst_23 : f32 to vector<2x32xf32>
    %42 = arith.addf %41, %40 : vector<2x32xf32>
    %43 = arith.divf %41, %42 : vector<2x32xf32>
    %44 = math.tanh %29 : vector<2x32xf32>
    %45 = arith.negf %33 : vector<2x32xf32>
    %46 = math.exp %45 : vector<2x32xf32>
    %cst_24 = arith.constant 1.000000e+00 : f32
    %47 = vector.broadcast %cst_24 : f32 to vector<2x32xf32>
    %48 = arith.addf %47, %46 : vector<2x32xf32>
    %49 = arith.divf %47, %48 : vector<2x32xf32>
    %50 = arith.mulf %43, %14 : vector<2x32xf32>
    %51 = arith.mulf %38, %44 : vector<2x32xf32>
    %52 = arith.addf %50, %51 : vector<2x32xf32>
    %53 = math.tanh %52 : vector<2x32xf32>
    %54 = arith.mulf %49, %53 : vector<2x32xf32>
    %c0_i32_25 = arith.constant 0 : i32
    %55 = arith.addi %4, %c0_i32_25 : i32
    %56 = vector.broadcast %55 : i32 to vector<2x1xi32>
    %57 = arith.cmpi sgt, %3, %56 : vector<2x1xi32>
    %58 = vector.shape_cast %57 : vector<2x1xi1> to vector<2x1xi1>
    %59 = vector.broadcast %58 : vector<2x1xi1> to vector<2x32xi1>
    %60 = arith.select %59, %54, %13 : vector<2x32xi1>, vector<2x32xf32>
    %61 = vector.shape_cast %57 : vector<2x1xi1> to vector<2x1xi1>
    %62 = vector.broadcast %61 : vector<2x1xi1> to vector<2x32xi1>
    %63 = arith.select %62, %52, %14 : vector<2x32xi1>, vector<2x32xf32>
    %cst_26 = arith.constant 0.000000e+00 : f32
    %64 = vector.broadcast %cst_26 : f32 to vector<2x32xf32>
    %65 = vector.shape_cast %57 : vector<2x1xi1> to vector<2x1xi1>
    %66 = vector.broadcast %65 : vector<2x1xi1> to vector<2x32xi1>
    %67 = arith.select %66, %54, %64 : vector<2x32xi1>, vector<2x32xf32>
    %c0_27 = arith.constant 0 : index
    %c0_28 = arith.constant 0 : index
    %c0_29 = arith.constant 0 : index
    %68 = vector.load %arg4[%c0_27, %c0_28, %c0_29] : memref<8x2x32xf32, #tpu.memory_space<vmem>>, vector<1x2x32xf32>
    %69 = vector.shape_cast %68 : vector<1x2x32xf32> to vector<2x32xf32>
    %70 = vector.shape_cast %67 : vector<2x32xf32> to vector<1x2x32xf32>
    tpu.vector_store %arg4[%c0_27, %c0_28, %c0_29], %70 {strides = array<i32>} : memref<8x2x32xf32, #tpu.memory_space<vmem>>, vector<1x2x32xf32>,
    %c1_30 = arith.constant 1 : index
    %c0_31 = arith.constant 0 : index
    %c0_32 = arith.constant 0 : index
    %c0_33 = arith.constant 0 : index
    %71 = vector.load %arg1[%c1_30, %c0_31, %c0_32, %c0_33] : memref<8x4x2x32xf32, #tpu.memory_space<vmem>>, vector<1x4x2x32xf32>
    %72 = vector.shape_cast %71 : vector<1x4x2x32xf32> to vector<4x2x32xf32>
    %73 = arith.truncf %60 : vector<2x32xf32> to vector<2x32xbf16>
    %74 = vector.extract_strided_slice %72 {offsets = [0, 0, 0], sizes = [1, 2, 32], strides = [1, 1, 1]} : vector<4x2x32xf32> to vector<1x2x32xf32>
    %75 = vector.shape_cast %74 : vector<1x2x32xf32> to vector<2x32xf32>
    %cst_34 = arith.constant dense<0.000000e+00> : vector<2x32xf32>
    %76 = tpu.matmul %73, %6, %cst_34 {dimension_numbers = #tpu.dot_dimension_numbers<[1], [0], [0], [1], [0, 0, 1, 1], [], []>} : vector<2x32xbf16>, vector<32x32xbf16>, vector<2x32xf32> -> vector<2x32xf32>
    %77 = arith.addf %75, %76 : vector<2x32xf32>
    %78 = vector.extract_strided_slice %72 {offsets = [1, 0, 0], sizes = [1, 2, 32], strides = [1, 1, 1]} : vector<4x2x32xf32> to vector<1x2x32xf32>
    %79 = vector.shape_cast %78 : vector<1x2x32xf32> to vector<2x32xf32>
    %cst_35 = arith.constant dense<0.000000e+00> : vector<2x32xf32>
    %80 = tpu.matmul %73, %8, %cst_35 {dimension_numbers = #tpu.dot_dimension_numbers<[1], [0], [0], [1], [0, 0, 1, 1], [], []>} : vector<2x32xbf16>, vector<32x32xbf16>, vector<2x32xf32> -> vector<2x32xf32>
    %81 = arith.addf %79, %80 : vector<2x32xf32>
    %82 = vector.extract_strided_slice %72 {offsets = [2, 0, 0], sizes = [1, 2, 32], strides = [1, 1, 1]} : vector<4x2x32xf32> to vector<1x2x32xf32>
    %83 = vector.shape_cast %82 : vector<1x2x32xf32> to vector<2x32xf32>
    %cst_36 = arith.constant dense<0.000000e+00> : vector<2x32xf32>
    %84 = tpu.matmul %73, %10, %cst_36 {dimension_numbers = #tpu.dot_dimension_numbers<[1], [0], [0], [1], [0, 0, 1, 1], [], []>} : vector<2x32xbf16>, vector<32x32xbf16>, vector<2x32xf32> -> vector<2x32xf32>
    %85 = arith.addf %83, %84 : vector<2x32xf32>
    %86 = vector.extract_strided_slice %72 {offsets = [3, 0, 0], sizes = [1, 2, 32], strides = [1, 1, 1]} : vector<4x2x32xf32> to vector<1x2x32xf32>
    %87 = vector.shape_cast %86 : vector<1x2x32xf32> to vector<2x32xf32>
    %cst_37 = arith.constant dense<0.000000e+00> : vector<2x32xf32>
    %88 = tpu.matmul %73, %12, %cst_37 {dimension_numbers = #tpu.dot_dimension_numbers<[1], [0], [0], [1], [0, 0, 1, 1], [], []>} : vector<2x32xbf16>, vector<32x32xbf16>, vector<2x32xf32> -> vector<2x32xf32>
    %89 = arith.addf %87, %88 : vector<2x32xf32>
    %90 = arith.negf %77 : vector<2x32xf32>
    %91 = math.exp %90 : vector<2x32xf32>
    %cst_38 = arith.constant 1.000000e+00 : f32
    %92 = vector.broadcast %cst_38 : f32 to vector<2x32xf32>
    %93 = arith.addf %92, %91 : vector<2x32xf32>
    %94 = arith.divf %92, %93 : vector<2x32xf32>
    %95 = arith.negf %81 : vector<2x32xf32>
    %96 = math.exp %95 : vector<2x32xf32>
    %cst_39 = arith.constant 1.000000e+00 : f32
    %97 = vector.broadcast %cst_39 : f32 to vector<2x32xf32>
    %98 = arith.addf %97, %96 : vector<2x32xf32>
    %99 = arith.divf %97, %98 : vector<2x32xf32>
    %100 = math.tanh %85 : vector<2x32xf32>
    %101 = arith.negf %89 : vector<2x32xf32>
    %102 = math.exp %101 : vector<2x32xf32>
    %cst_40 = arith.constant 1.000000e+00 : f32
    %103 = vector.broadcast %cst_40 : f32 to vector<2x32xf32>
    %104 = arith.addf %103, %102 : vector<2x32xf32>
    %105 = arith.divf %103, %104 : vector<2x32xf32>
    %106 = arith.mulf %99, %63 : vector<2x32xf32>
    %107 = arith.mulf %94, %100 : vector<2x32xf32>
    %108 = arith.addf %106, %107 : vector<2x32xf32>
    %109 = math.tanh %108 : vector<2x32xf32>
    %110 = arith.mulf %105, %109 : vector<2x32xf32>
    %c1_i32 = arith.constant 1 : i32
    %111 = arith.addi %4, %c1_i32 : i32
    %112 = vector.broadcast %111 : i32 to vector<2x1xi32>
    %113 = arith.cmpi sgt, %3, %112 : vector<2x1xi32>
    %114 = vector.shape_cast %113 : vector<2x1xi1> to vector<2x1xi1>
    %115 = vector.broadcast %114 : vector<2x1xi1> to vector<2x32xi1>
    %116 = arith.select %115, %110, %60 : vector<2x32xi1>, vector<2x32xf32>
    %117 = vector.shape_cast %113 : vector<2x1xi1> to vector<2x1xi1>
    %118 = vector.broadcast %117 : vector<2x1xi1> to vector<2x32xi1>
    %119 = arith.select %118, %108, %63 : vector<2x32xi1>, vector<2x32xf32>
    %cst_41 = arith.constant 0.000000e+00 : f32
    %120 = vector.broadcast %cst_41 : f32 to vector<2x32xf32>
    %121 = vector.shape_cast %113 : vector<2x1xi1> to vector<2x1xi1>
    %122 = vector.broadcast %121 : vector<2x1xi1> to vector<2x32xi1>
    %123 = arith.select %122, %110, %120 : vector<2x32xi1>, vector<2x32xf32>
    %c1_42 = arith.constant 1 : index
    %c0_43 = arith.constant 0 : index
    %c0_44 = arith.constant 0 : index
    %124 = vector.load %arg4[%c1_42, %c0_43, %c0_44] : memref<8x2x32xf32, #tpu.memory_space<vmem>>, vector<1x2x32xf32>
    %125 = vector.shape_cast %124 : vector<1x2x32xf32> to vector<2x32xf32>
    %126 = vector.shape_cast %123 : vector<2x32xf32> to vector<1x2x32xf32>
    tpu.vector_store %arg4[%c1_42, %c0_43, %c0_44], %126 {strides = array<i32>} : memref<8x2x32xf32, #tpu.memory_space<vmem>>, vector<1x2x32xf32>,
    %c2_45 = arith.constant 2 : index
    %c0_46 = arith.constant 0 : index
    %c0_47 = arith.constant 0 : index
    %c0_48 = arith.constant 0 : index
    %127 = vector.load %arg1[%c2_45, %c0_46, %c0_47, %c0_48] : memref<8x4x2x32xf32, #tpu.memory_space<vmem>>, vector<1x4x2x32xf32>
    %128 = vector.shape_cast %127 : vector<1x4x2x32xf32> to vector<4x2x32xf32>
    %129 = arith.truncf %116 : vector<2x32xf32> to vector<2x32xbf16>
    %130 = vector.extract_strided_slice %128 {offsets = [0, 0, 0], sizes = [1, 2, 32], strides = [1, 1, 1]} : vector<4x2x32xf32> to vector<1x2x32xf32>
    %131 = vector.shape_cast %130 : vector<1x2x32xf32> to vector<2x32xf32>
    %cst_49 = arith.constant dense<0.000000e+00> : vector<2x32xf32>
    %132 = tpu.matmul %129, %6, %cst_49 {dimension_numbers = #tpu.dot_dimension_numbers<[1], [0], [0], [1], [0, 0, 1, 1], [], []>} : vector<2x32xbf16>, vector<32x32xbf16>, vector<2x32xf32> -> vector<2x32xf32>
    %133 = arith.addf %131, %132 : vector<2x32xf32>
    %134 = vector.extract_strided_slice %128 {offsets = [1, 0, 0], sizes = [1, 2, 32], strides = [1, 1, 1]} : vector<4x2x32xf32> to vector<1x2x32xf32>
    %135 = vector.shape_cast %134 : vector<1x2x32xf32> to vector<2x32xf32>
    %cst_50 = arith.constant dense<0.000000e+00> : vector<2x32xf32>
    %136 = tpu.matmul %129, %8, %cst_50 {dimension_numbers = #tpu.dot_dimension_numbers<[1], [0], [0], [1], [0, 0, 1, 1], [], []>} : vector<2x32xbf16>, vector<32x32xbf16>, vector<2x32xf32> -> vector<2x32xf32>
    %137 = arith.addf %135, %136 : vector<2x32xf32>
    %138 = vector.extract_strided_slice %128 {offsets = [2, 0, 0], sizes = [1, 2, 32], strides = [1, 1, 1]} : vector<4x2x32xf32> to vector<1x2x32xf32>
    %139 = vector.shape_cast %138 : vector<1x2x32xf32> to vector<2x32xf32>
    %cst_51 = arith.constant dense<0.000000e+00> : vector<2x32xf32>
    %140 = tpu.matmul %129, %10, %cst_51 {dimension_numbers = #tpu.dot_dimension_numbers<[1], [0], [0], [1], [0, 0, 1, 1], [], []>} : vector<2x32xbf16>, vector<32x32xbf16>, vector<2x32xf32> -> vector<2x32xf32>
    %141 = arith.addf %139, %140 : vector<2x32xf32>
    %142 = vector.extract_strided_slice %128 {offsets = [3, 0, 0], sizes = [1, 2, 32], strides = [1, 1, 1]} : vector<4x2x32xf32> to vector<1x2x32xf32>
    %143 = vector.shape_cast %142 : vector<1x2x32xf32> to vector<2x32xf32>
    %cst_52 = arith.constant dense<0.000000e+00> : vector<2x32xf32>
    %144 = tpu.matmul %129, %12, %cst_52 {dimension_numbers = #tpu.dot_dimension_numbers<[1], [0], [0], [1], [0, 0, 1, 1], [], []>} : vector<2x32xbf16>, vector<32x32xbf16>, vector<2x32xf32> -> vector<2x32xf32>
    %145 = arith.addf %143, %144 : vector<2x32xf32>
    %146 = arith.negf %133 : vector<2x32xf32>
    %147 = math.exp %146 : vector<2x32xf32>
    %cst_53 = arith.constant 1.000000e+00 : f32
    %148 = vector.broadcast %cst_53 : f32 to vector<2x32xf32>
    %149 = arith.addf %148, %147 : vector<2x32xf32>
    %150 = arith.divf %148, %149 : vector<2x32xf32>
    %151 = arith.negf %137 : vector<2x32xf32>
    %152 = math.exp %151 : vector<2x32xf32>
    %cst_54 = arith.constant 1.000000e+00 : f32
    %153 = vector.broadcast %cst_54 : f32 to vector<2x32xf32>
    %154 = arith.addf %153, %152 : vector<2x32xf32>
    %155 = arith.divf %153, %154 : vector<2x32xf32>
    %156 = math.tanh %141 : vector<2x32xf32>
    %157 = arith.negf %145 : vector<2x32xf32>
    %158 = math.exp %157 : vector<2x32xf32>
    %cst_55 = arith.constant 1.000000e+00 : f32
    %159 = vector.broadcast %cst_55 : f32 to vector<2x32xf32>
    %160 = arith.addf %159, %158 : vector<2x32xf32>
    %161 = arith.divf %159, %160 : vector<2x32xf32>
    %162 = arith.mulf %155, %119 : vector<2x32xf32>
    %163 = arith.mulf %150, %156 : vector<2x32xf32>
    %164 = arith.addf %162, %163 : vector<2x32xf32>
    %165 = math.tanh %164 : vector<2x32xf32>
    %166 = arith.mulf %161, %165 : vector<2x32xf32>
    %c2_i32 = arith.constant 2 : i32
    %167 = arith.addi %4, %c2_i32 : i32
    %168 = vector.broadcast %167 : i32 to vector<2x1xi32>
    %169 = arith.cmpi sgt, %3, %168 : vector<2x1xi32>
    %170 = vector.shape_cast %169 : vector<2x1xi1> to vector<2x1xi1>
    %171 = vector.broadcast %170 : vector<2x1xi1> to vector<2x32xi1>
    %172 = arith.select %171, %166, %116 : vector<2x32xi1>, vector<2x32xf32>
    %173 = vector.shape_cast %169 : vector<2x1xi1> to vector<2x1xi1>
    %174 = vector.broadcast %173 : vector<2x1xi1> to vector<2x32xi1>
    %175 = arith.select %174, %164, %119 : vector<2x32xi1>, vector<2x32xf32>
    %cst_56 = arith.constant 0.000000e+00 : f32
    %176 = vector.broadcast %cst_56 : f32 to vector<2x32xf32>
    %177 = vector.shape_cast %169 : vector<2x1xi1> to vector<2x1xi1>
    %178 = vector.broadcast %177 : vector<2x1xi1> to vector<2x32xi1>
    %179 = arith.select %178, %166, %176 : vector<2x32xi1>, vector<2x32xf32>
    %c2_57 = arith.constant 2 : index
    %c0_58 = arith.constant 0 : index
    %c0_59 = arith.constant 0 : index
    %180 = vector.load %arg4[%c2_57, %c0_58, %c0_59] : memref<8x2x32xf32, #tpu.memory_space<vmem>>, vector<1x2x32xf32>
    %181 = vector.shape_cast %180 : vector<1x2x32xf32> to vector<2x32xf32>
    %182 = vector.shape_cast %179 : vector<2x32xf32> to vector<1x2x32xf32>
    tpu.vector_store %arg4[%c2_57, %c0_58, %c0_59], %182 {strides = array<i32>} : memref<8x2x32xf32, #tpu.memory_space<vmem>>, vector<1x2x32xf32>,
    %c3_60 = arith.constant 3 : index
    %c0_61 = arith.constant 0 : index
    %c0_62 = arith.constant 0 : index
    %c0_63 = arith.constant 0 : index
    %183 = vector.load %arg1[%c3_60, %c0_61, %c0_62, %c0_63] : memref<8x4x2x32xf32, #tpu.memory_space<vmem>>, vector<1x4x2x32xf32>
    %184 = vector.shape_cast %183 : vector<1x4x2x32xf32> to vector<4x2x32xf32>
    %185 = arith.truncf %172 : vector<2x32xf32> to vector<2x32xbf16>
    %186 = vector.extract_strided_slice %184 {offsets = [0, 0, 0], sizes = [1, 2, 32], strides = [1, 1, 1]} : vector<4x2x32xf32> to vector<1x2x32xf32>
    %187 = vector.shape_cast %186 : vector<1x2x32xf32> to vector<2x32xf32>
    %cst_64 = arith.constant dense<0.000000e+00> : vector<2x32xf32>
    %188 = tpu.matmul %185, %6, %cst_64 {dimension_numbers = #tpu.dot_dimension_numbers<[1], [0], [0], [1], [0, 0, 1, 1], [], []>} : vector<2x32xbf16>, vector<32x32xbf16>, vector<2x32xf32> -> vector<2x32xf32>
    %189 = arith.addf %187, %188 : vector<2x32xf32>
    %190 = vector.extract_strided_slice %184 {offsets = [1, 0, 0], sizes = [1, 2, 32], strides = [1, 1, 1]} : vector<4x2x32xf32> to vector<1x2x32xf32>
    %191 = vector.shape_cast %190 : vector<1x2x32xf32> to vector<2x32xf32>
    %cst_65 = arith.constant dense<0.000000e+00> : vector<2x32xf32>
    %192 = tpu.matmul %185, %8, %cst_65 {dimension_numbers = #tpu.dot_dimension_numbers<[1], [0], [0], [1], [0, 0, 1, 1], [], []>} : vector<2x32xbf16>, vector<32x32xbf16>, vector<2x32xf32> -> vector<2x32xf32>
    %193 = arith.addf %191, %192 : vector<2x32xf32>
    %194 = vector.extract_strided_slice %184 {offsets = [2, 0, 0], sizes = [1, 2, 32], strides = [1, 1, 1]} : vector<4x2x32xf32> to vector<1x2x32xf32>
    %195 = vector.shape_cast %194 : vector<1x2x32xf32> to vector<2x32xf32>
    %cst_66 = arith.constant dense<0.000000e+00> : vector<2x32xf32>
    %196 = tpu.matmul %185, %10, %cst_66 {dimension_numbers = #tpu.dot_dimension_numbers<[1], [0], [0], [1], [0, 0, 1, 1], [], []>} : vector<2x32xbf16>, vector<32x32xbf16>, vector<2x32xf32> -> vector<2x32xf32>
    %197 = arith.addf %195, %196 : vector<2x32xf32>
    %198 = vector.extract_strided_slice %184 {offsets = [3, 0, 0], sizes = [1, 2, 32], strides = [1, 1, 1]} : vector<4x2x32xf32> to vector<1x2x32xf32>
    %199 = vector.shape_cast %198 : vector<1x2x32xf32> to vector<2x32xf32>
    %cst_67 = arith.constant dense<0.000000e+00> : vector<2x32xf32>
    %200 = tpu.matmul %185, %12, %cst_67 {dimension_numbers = #tpu.dot_dimension_numbers<[1], [0], [0], [1], [0, 0, 1, 1], [], []>} : vector<2x32xbf16>, vector<32x32xbf16>, vector<2x32xf32> -> vector<2x32xf32>
    %201 = arith.addf %199, %200 : vector<2x32xf32>
    %202 = arith.negf %189 : vector<2x32xf32>
    %203 = math.exp %202 : vector<2x32xf32>
    %cst_68 = arith.constant 1.000000e+00 : f32
    %204 = vector.broadcast %cst_68 : f32 to vector<2x32xf32>
    %205 = arith.addf %204, %203 : vector<2x32xf32>
    %206 = arith.divf %204, %205 : vector<2x32xf32>
    %207 = arith.negf %193 : vector<2x32xf32>
    %208 = math.exp %207 : vector<2x32xf32>
    %cst_69 = arith.constant 1.000000e+00 : f32
    %209 = vector.broadcast %cst_69 : f32 to vector<2x32xf32>
    %210 = arith.addf %209, %208 : vector<2x32xf32>
    %211 = arith.divf %209, %210 : vector<2x32xf32>
    %212 = math.tanh %197 : vector<2x32xf32>
    %213 = arith.negf %201 : vector<2x32xf32>
    %214 = math.exp %213 : vector<2x32xf32>
    %cst_70 = arith.constant 1.000000e+00 : f32
    %215 = vector.broadcast %cst_70 : f32 to vector<2x32xf32>
    %216 = arith.addf %215, %214 : vector<2x32xf32>
    %217 = arith.divf %215, %216 : vector<2x32xf32>
    %218 = arith.mulf %211, %175 : vector<2x32xf32>
    %219 = arith.mulf %206, %212 : vector<2x32xf32>
    %220 = arith.addf %218, %219 : vector<2x32xf32>
    %221 = math.tanh %220 : vector<2x32xf32>
    %222 = arith.mulf %217, %221 : vector<2x32xf32>
    %c3_i32 = arith.constant 3 : i32
    %223 = arith.addi %4, %c3_i32 : i32
    %224 = vector.broadcast %223 : i32 to vector<2x1xi32>
    %225 = arith.cmpi sgt, %3, %224 : vector<2x1xi32>
    %226 = vector.shape_cast %225 : vector<2x1xi1> to vector<2x1xi1>
    %227 = vector.broadcast %226 : vector<2x1xi1> to vector<2x32xi1>
    %228 = arith.select %227, %222, %172 : vector<2x32xi1>, vector<2x32xf32>
    %229 = vector.shape_cast %225 : vector<2x1xi1> to vector<2x1xi1>
    %230 = vector.broadcast %229 : vector<2x1xi1> to vector<2x32xi1>
    %231 = arith.select %230, %220, %175 : vector<2x32xi1>, vector<2x32xf32>
    %cst_71 = arith.constant 0.000000e+00 : f32
    %232 = vector.broadcast %cst_71 : f32 to vector<2x32xf32>
    %233 = vector.shape_cast %225 : vector<2x1xi1> to vector<2x1xi1>
    %234 = vector.broadcast %233 : vector<2x1xi1> to vector<2x32xi1>
    %235 = arith.select %234, %222, %232 : vector<2x32xi1>, vector<2x32xf32>
    %c3_72 = arith.constant 3 : index
    %c0_73 = arith.constant 0 : index
    %c0_74 = arith.constant 0 : index
    %236 = vector.load %arg4[%c3_72, %c0_73, %c0_74] : memref<8x2x32xf32, #tpu.memory_space<vmem>>, vector<1x2x32xf32>
    %237 = vector.shape_cast %236 : vector<1x2x32xf32> to vector<2x32xf32>
    %238 = vector.shape_cast %235 : vector<2x32xf32> to vector<1x2x32xf32>
    tpu.vector_store %arg4[%c3_72, %c0_73, %c0_74], %238 {strides = array<i32>} : memref<8x2x32xf32, #tpu.memory_space<vmem>>, vector<1x2x32xf32>,
    %c4 = arith.constant 4 : index
    %c0_75 = arith.constant 0 : index
    %c0_76 = arith.constant 0 : index
    %c0_77 = arith.constant 0 : index
    %239 = vector.load %arg1[%c4, %c0_75, %c0_76, %c0_77] : memref<8x4x2x32xf32, #tpu.memory_space<vmem>>, vector<1x4x2x32xf32>
    %240 = vector.shape_cast %239 : vector<1x4x2x32xf32> to vector<4x2x32xf32>
    %241 = arith.truncf %228 : vector<2x32xf32> to vector<2x32xbf16>
    %242 = vector.extract_strided_slice %240 {offsets = [0, 0, 0], sizes = [1, 2, 32], strides = [1, 1, 1]} : vector<4x2x32xf32> to vector<1x2x32xf32>
    %243 = vector.shape_cast %242 : vector<1x2x32xf32> to vector<2x32xf32>
    %cst_78 = arith.constant dense<0.000000e+00> : vector<2x32xf32>
    %244 = tpu.matmul %241, %6, %cst_78 {dimension_numbers = #tpu.dot_dimension_numbers<[1], [0], [0], [1], [0, 0, 1, 1], [], []>} : vector<2x32xbf16>, vector<32x32xbf16>, vector<2x32xf32> -> vector<2x32xf32>
    %245 = arith.addf %243, %244 : vector<2x32xf32>
    %246 = vector.extract_strided_slice %240 {offsets = [1, 0, 0], sizes = [1, 2, 32], strides = [1, 1, 1]} : vector<4x2x32xf32> to vector<1x2x32xf32>
    %247 = vector.shape_cast %246 : vector<1x2x32xf32> to vector<2x32xf32>
    %cst_79 = arith.constant dense<0.000000e+00> : vector<2x32xf32>
    %248 = tpu.matmul %241, %8, %cst_79 {dimension_numbers = #tpu.dot_dimension_numbers<[1], [0], [0], [1], [0, 0, 1, 1], [], []>} : vector<2x32xbf16>, vector<32x32xbf16>, vector<2x32xf32> -> vector<2x32xf32>
    %249 = arith.addf %247, %248 : vector<2x32xf32>
    %250 = vector.extract_strided_slice %240 {offsets = [2, 0, 0], sizes = [1, 2, 32], strides = [1, 1, 1]} : vector<4x2x32xf32> to vector<1x2x32xf32>
    %251 = vector.shape_cast %250 : vector<1x2x32xf32> to vector<2x32xf32>
    %cst_80 = arith.constant dense<0.000000e+00> : vector<2x32xf32>
    %252 = tpu.matmul %241, %10, %cst_80 {dimension_numbers = #tpu.dot_dimension_numbers<[1], [0], [0], [1], [0, 0, 1, 1], [], []>} : vector<2x32xbf16>, vector<32x32xbf16>, vector<2x32xf32> -> vector<2x32xf32>
    %253 = arith.addf %251, %252 : vector<2x32xf32>
    %254 = vector.extract_strided_slice %240 {offsets = [3, 0, 0], sizes = [1, 2, 32], strides = [1, 1, 1]} : vector<4x2x32xf32> to vector<1x2x32xf32>
    %255 = vector.shape_cast %254 : vector<1x2x32xf32> to vector<2x32xf32>
    %cst_81 = arith.constant dense<0.000000e+00> : vector<2x32xf32>
    %256 = tpu.matmul %241, %12, %cst_81 {dimension_numbers = #tpu.dot_dimension_numbers<[1], [0], [0], [1], [0, 0, 1, 1], [], []>} : vector<2x32xbf16>, vector<32x32xbf16>, vector<2x32xf32> -> vector<2x32xf32>
    %257 = arith.addf %255, %256 : vector<2x32xf32>
    %258 = arith.negf %245 : vector<2x32xf32>
    %259 = math.exp %258 : vector<2x32xf32>
    %cst_82 = arith.constant 1.000000e+00 : f32
    %260 = vector.broadcast %cst_82 : f32 to vector<2x32xf32>
    %261 = arith.addf %260, %259 : vector<2x32xf32>
    %262 = arith.divf %260, %261 : vector<2x32xf32>
    %263 = arith.negf %249 : vector<2x32xf32>
    %264 = math.exp %263 : vector<2x32xf32>
    %cst_83 = arith.constant 1.000000e+00 : f32
    %265 = vector.broadcast %cst_83 : f32 to vector<2x32xf32>
    %266 = arith.addf %265, %264 : vector<2x32xf32>
    %267 = arith.divf %265, %266 : vector<2x32xf32>
    %268 = math.tanh %253 : vector<2x32xf32>
    %269 = arith.negf %257 : vector<2x32xf32>
    %270 = math.exp %269 : vector<2x32xf32>
    %cst_84 = arith.constant 1.000000e+00 : f32
    %271 = vector.broadcast %cst_84 : f32 to vector<2x32xf32>
    %272 = arith.addf %271, %270 : vector<2x32xf32>
    %273 = arith.divf %271, %272 : vector<2x32xf32>
    %274 = arith.mulf %267, %231 : vector<2x32xf32>
    %275 = arith.mulf %262, %268 : vector<2x32xf32>
    %276 = arith.addf %274, %275 : vector<2x32xf32>
    %277 = math.tanh %276 : vector<2x32xf32>
    %278 = arith.mulf %273, %277 : vector<2x32xf32>
    %c4_i32 = arith.constant 4 : i32
    %279 = arith.addi %4, %c4_i32 : i32
    %280 = vector.broadcast %279 : i32 to vector<2x1xi32>
    %281 = arith.cmpi sgt, %3, %280 : vector<2x1xi32>
    %282 = vector.shape_cast %281 : vector<2x1xi1> to vector<2x1xi1>
    %283 = vector.broadcast %282 : vector<2x1xi1> to vector<2x32xi1>
    %284 = arith.select %283, %278, %228 : vector<2x32xi1>, vector<2x32xf32>
    %285 = vector.shape_cast %281 : vector<2x1xi1> to vector<2x1xi1>
    %286 = vector.broadcast %285 : vector<2x1xi1> to vector<2x32xi1>
    %287 = arith.select %286, %276, %231 : vector<2x32xi1>, vector<2x32xf32>
    %cst_85 = arith.constant 0.000000e+00 : f32
    %288 = vector.broadcast %cst_85 : f32 to vector<2x32xf32>
    %289 = vector.shape_cast %281 : vector<2x1xi1> to vector<2x1xi1>
    %290 = vector.broadcast %289 : vector<2x1xi1> to vector<2x32xi1>
    %291 = arith.select %290, %278, %288 : vector<2x32xi1>, vector<2x32xf32>
    %c4_86 = arith.constant 4 : index
    %c0_87 = arith.constant 0 : index
    %c0_88 = arith.constant 0 : index
    %292 = vector.load %arg4[%c4_86, %c0_87, %c0_88] : memref<8x2x32xf32, #tpu.memory_space<vmem>>, vector<1x2x32xf32>
    %293 = vector.shape_cast %292 : vector<1x2x32xf32> to vector<2x32xf32>
    %294 = vector.shape_cast %291 : vector<2x32xf32> to vector<1x2x32xf32>
    tpu.vector_store %arg4[%c4_86, %c0_87, %c0_88], %294 {strides = array<i32>} : memref<8x2x32xf32, #tpu.memory_space<vmem>>, vector<1x2x32xf32>,
    %c5 = arith.constant 5 : index
    %c0_89 = arith.constant 0 : index
    %c0_90 = arith.constant 0 : index
    %c0_91 = arith.constant 0 : index
    %295 = vector.load %arg1[%c5, %c0_89, %c0_90, %c0_91] : memref<8x4x2x32xf32, #tpu.memory_space<vmem>>, vector<1x4x2x32xf32>
    %296 = vector.shape_cast %295 : vector<1x4x2x32xf32> to vector<4x2x32xf32>
    %297 = arith.truncf %284 : vector<2x32xf32> to vector<2x32xbf16>
    %298 = vector.extract_strided_slice %296 {offsets = [0, 0, 0], sizes = [1, 2, 32], strides = [1, 1, 1]} : vector<4x2x32xf32> to vector<1x2x32xf32>
    %299 = vector.shape_cast %298 : vector<1x2x32xf32> to vector<2x32xf32>
    %cst_92 = arith.constant dense<0.000000e+00> : vector<2x32xf32>
    %300 = tpu.matmul %297, %6, %cst_92 {dimension_numbers = #tpu.dot_dimension_numbers<[1], [0], [0], [1], [0, 0, 1, 1], [], []>} : vector<2x32xbf16>, vector<32x32xbf16>, vector<2x32xf32> -> vector<2x32xf32>
    %301 = arith.addf %299, %300 : vector<2x32xf32>
    %302 = vector.extract_strided_slice %296 {offsets = [1, 0, 0], sizes = [1, 2, 32], strides = [1, 1, 1]} : vector<4x2x32xf32> to vector<1x2x32xf32>
    %303 = vector.shape_cast %302 : vector<1x2x32xf32> to vector<2x32xf32>
    %cst_93 = arith.constant dense<0.000000e+00> : vector<2x32xf32>
    %304 = tpu.matmul %297, %8, %cst_93 {dimension_numbers = #tpu.dot_dimension_numbers<[1], [0], [0], [1], [0, 0, 1, 1], [], []>} : vector<2x32xbf16>, vector<32x32xbf16>, vector<2x32xf32> -> vector<2x32xf32>
    %305 = arith.addf %303, %304 : vector<2x32xf32>
    %306 = vector.extract_strided_slice %296 {offsets = [2, 0, 0], sizes = [1, 2, 32], strides = [1, 1, 1]} : vector<4x2x32xf32> to vector<1x2x32xf32>
    %307 = vector.shape_cast %306 : vector<1x2x32xf32> to vector<2x32xf32>
    %cst_94 = arith.constant dense<0.000000e+00> : vector<2x32xf32>
    %308 = tpu.matmul %297, %10, %cst_94 {dimension_numbers = #tpu.dot_dimension_numbers<[1], [0], [0], [1], [0, 0, 1, 1], [], []>} : vector<2x32xbf16>, vector<32x32xbf16>, vector<2x32xf32> -> vector<2x32xf32>
    %309 = arith.addf %307, %308 : vector<2x32xf32>
    %310 = vector.extract_strided_slice %296 {offsets = [3, 0, 0], sizes = [1, 2, 32], strides = [1, 1, 1]} : vector<4x2x32xf32> to vector<1x2x32xf32>
    %311 = vector.shape_cast %310 : vector<1x2x32xf32> to vector<2x32xf32>
    %cst_95 = arith.constant dense<0.000000e+00> : vector<2x32xf32>
    %312 = tpu.matmul %297, %12, %cst_95 {dimension_numbers = #tpu.dot_dimension_numbers<[1], [0], [0], [1], [0, 0, 1, 1], [], []>} : vector<2x32xbf16>, vector<32x32xbf16>, vector<2x32xf32> -> vector<2x32xf32>
    %313 = arith.addf %311, %312 : vector<2x32xf32>
    %314 = arith.negf %301 : vector<2x32xf32>
    %315 = math.exp %314 : vector<2x32xf32>
    %cst_96 = arith.constant 1.000000e+00 : f32
    %316 = vector.broadcast %cst_96 : f32 to vector<2x32xf32>
    %317 = arith.addf %316, %315 : vector<2x32xf32>
    %318 = arith.divf %316, %317 : vector<2x32xf32>
    %319 = arith.negf %305 : vector<2x32xf32>
    %320 = math.exp %319 : vector<2x32xf32>
    %cst_97 = arith.constant 1.000000e+00 : f32
    %321 = vector.broadcast %cst_97 : f32 to vector<2x32xf32>
    %322 = arith.addf %321, %320 : vector<2x32xf32>
    %323 = arith.divf %321, %322 : vector<2x32xf32>
    %324 = math.tanh %309 : vector<2x32xf32>
    %325 = arith.negf %313 : vector<2x32xf32>
    %326 = math.exp %325 : vector<2x32xf32>
    %cst_98 = arith.constant 1.000000e+00 : f32
    %327 = vector.broadcast %cst_98 : f32 to vector<2x32xf32>
    %328 = arith.addf %327, %326 : vector<2x32xf32>
    %329 = arith.divf %327, %328 : vector<2x32xf32>
    %330 = arith.mulf %323, %287 : vector<2x32xf32>
    %331 = arith.mulf %318, %324 : vector<2x32xf32>
    %332 = arith.addf %330, %331 : vector<2x32xf32>
    %333 = math.tanh %332 : vector<2x32xf32>
    %334 = arith.mulf %329, %333 : vector<2x32xf32>
    %c5_i32 = arith.constant 5 : i32
    %335 = arith.addi %4, %c5_i32 : i32
    %336 = vector.broadcast %335 : i32 to vector<2x1xi32>
    %337 = arith.cmpi sgt, %3, %336 : vector<2x1xi32>
    %338 = vector.shape_cast %337 : vector<2x1xi1> to vector<2x1xi1>
    %339 = vector.broadcast %338 : vector<2x1xi1> to vector<2x32xi1>
    %340 = arith.select %339, %334, %284 : vector<2x32xi1>, vector<2x32xf32>
    %341 = vector.shape_cast %337 : vector<2x1xi1> to vector<2x1xi1>
    %342 = vector.broadcast %341 : vector<2x1xi1> to vector<2x32xi1>
    %343 = arith.select %342, %332, %287 : vector<2x32xi1>, vector<2x32xf32>
    %cst_99 = arith.constant 0.000000e+00 : f32
    %344 = vector.broadcast %cst_99 : f32 to vector<2x32xf32>
    %345 = vector.shape_cast %337 : vector<2x1xi1> to vector<2x1xi1>
    %346 = vector.broadcast %345 : vector<2x1xi1> to vector<2x32xi1>
    %347 = arith.select %346, %334, %344 : vector<2x32xi1>, vector<2x32xf32>
    %c5_100 = arith.constant 5 : index
    %c0_101 = arith.constant 0 : index
    %c0_102 = arith.constant 0 : index
    %348 = vector.load %arg4[%c5_100, %c0_101, %c0_102] : memref<8x2x32xf32, #tpu.memory_space<vmem>>, vector<1x2x32xf32>
    %349 = vector.shape_cast %348 : vector<1x2x32xf32> to vector<2x32xf32>
    %350 = vector.shape_cast %347 : vector<2x32xf32> to vector<1x2x32xf32>
    tpu.vector_store %arg4[%c5_100, %c0_101, %c0_102], %350 {strides = array<i32>} : memref<8x2x32xf32, #tpu.memory_space<vmem>>, vector<1x2x32xf32>,
    %c6 = arith.constant 6 : index
    %c0_103 = arith.constant 0 : index
    %c0_104 = arith.constant 0 : index
    %c0_105 = arith.constant 0 : index
    %351 = vector.load %arg1[%c6, %c0_103, %c0_104, %c0_105] : memref<8x4x2x32xf32, #tpu.memory_space<vmem>>, vector<1x4x2x32xf32>
    %352 = vector.shape_cast %351 : vector<1x4x2x32xf32> to vector<4x2x32xf32>
    %353 = arith.truncf %340 : vector<2x32xf32> to vector<2x32xbf16>
    %354 = vector.extract_strided_slice %352 {offsets = [0, 0, 0], sizes = [1, 2, 32], strides = [1, 1, 1]} : vector<4x2x32xf32> to vector<1x2x32xf32>
    %355 = vector.shape_cast %354 : vector<1x2x32xf32> to vector<2x32xf32>
    %cst_106 = arith.constant dense<0.000000e+00> : vector<2x32xf32>
    %356 = tpu.matmul %353, %6, %cst_106 {dimension_numbers = #tpu.dot_dimension_numbers<[1], [0], [0], [1], [0, 0, 1, 1], [], []>} : vector<2x32xbf16>, vector<32x32xbf16>, vector<2x32xf32> -> vector<2x32xf32>
    %357 = arith.addf %355, %356 : vector<2x32xf32>
    %358 = vector.extract_strided_slice %352 {offsets = [1, 0, 0], sizes = [1, 2, 32], strides = [1, 1, 1]} : vector<4x2x32xf32> to vector<1x2x32xf32>
    %359 = vector.shape_cast %358 : vector<1x2x32xf32> to vector<2x32xf32>
    %cst_107 = arith.constant dense<0.000000e+00> : vector<2x32xf32>
    %360 = tpu.matmul %353, %8, %cst_107 {dimension_numbers = #tpu.dot_dimension_numbers<[1], [0], [0], [1], [0, 0, 1, 1], [], []>} : vector<2x32xbf16>, vector<32x32xbf16>, vector<2x32xf32> -> vector<2x32xf32>
    %361 = arith.addf %359, %360 : vector<2x32xf32>
    %362 = vector.extract_strided_slice %352 {offsets = [2, 0, 0], sizes = [1, 2, 32], strides = [1, 1, 1]} : vector<4x2x32xf32> to vector<1x2x32xf32>
    %363 = vector.shape_cast %362 : vector<1x2x32xf32> to vector<2x32xf32>
    %cst_108 = arith.constant dense<0.000000e+00> : vector<2x32xf32>
    %364 = tpu.matmul %353, %10, %cst_108 {dimension_numbers = #tpu.dot_dimension_numbers<[1], [0], [0], [1], [0, 0, 1, 1], [], []>} : vector<2x32xbf16>, vector<32x32xbf16>, vector<2x32xf32> -> vector<2x32xf32>
    %365 = arith.addf %363, %364 : vector<2x32xf32>
    %366 = vector.extract_strided_slice %352 {offsets = [3, 0, 0], sizes = [1, 2, 32], strides = [1, 1, 1]} : vector<4x2x32xf32> to vector<1x2x32xf32>
    %367 = vector.shape_cast %366 : vector<1x2x32xf32> to vector<2x32xf32>
    %cst_109 = arith.constant dense<0.000000e+00> : vector<2x32xf32>
    %368 = tpu.matmul %353, %12, %cst_109 {dimension_numbers = #tpu.dot_dimension_numbers<[1], [0], [0], [1], [0, 0, 1, 1], [], []>} : vector<2x32xbf16>, vector<32x32xbf16>, vector<2x32xf32> -> vector<2x32xf32>
    %369 = arith.addf %367, %368 : vector<2x32xf32>
    %370 = arith.negf %357 : vector<2x32xf32>
    %371 = math.exp %370 : vector<2x32xf32>
    %cst_110 = arith.constant 1.000000e+00 : f32
    %372 = vector.broadcast %cst_110 : f32 to vector<2x32xf32>
    %373 = arith.addf %372, %371 : vector<2x32xf32>
    %374 = arith.divf %372, %373 : vector<2x32xf32>
    %375 = arith.negf %361 : vector<2x32xf32>
    %376 = math.exp %375 : vector<2x32xf32>
    %cst_111 = arith.constant 1.000000e+00 : f32
    %377 = vector.broadcast %cst_111 : f32 to vector<2x32xf32>
    %378 = arith.addf %377, %376 : vector<2x32xf32>
    %379 = arith.divf %377, %378 : vector<2x32xf32>
    %380 = math.tanh %365 : vector<2x32xf32>
    %381 = arith.negf %369 : vector<2x32xf32>
    %382 = math.exp %381 : vector<2x32xf32>
    %cst_112 = arith.constant 1.000000e+00 : f32
    %383 = vector.broadcast %cst_112 : f32 to vector<2x32xf32>
    %384 = arith.addf %383, %382 : vector<2x32xf32>
    %385 = arith.divf %383, %384 : vector<2x32xf32>
    %386 = arith.mulf %379, %343 : vector<2x32xf32>
    %387 = arith.mulf %374, %380 : vector<2x32xf32>
    %388 = arith.addf %386, %387 : vector<2x32xf32>
    %389 = math.tanh %388 : vector<2x32xf32>
    %390 = arith.mulf %385, %389 : vector<2x32xf32>
    %c6_i32 = arith.constant 6 : i32
    %391 = arith.addi %4, %c6_i32 : i32
    %392 = vector.broadcast %391 : i32 to vector<2x1xi32>
    %393 = arith.cmpi sgt, %3, %392 : vector<2x1xi32>
    %394 = vector.shape_cast %393 : vector<2x1xi1> to vector<2x1xi1>
    %395 = vector.broadcast %394 : vector<2x1xi1> to vector<2x32xi1>
    %396 = arith.select %395, %390, %340 : vector<2x32xi1>, vector<2x32xf32>
    %397 = vector.shape_cast %393 : vector<2x1xi1> to vector<2x1xi1>
    %398 = vector.broadcast %397 : vector<2x1xi1> to vector<2x32xi1>
    %399 = arith.select %398, %388, %343 : vector<2x32xi1>, vector<2x32xf32>
    %cst_113 = arith.constant 0.000000e+00 : f32
    %400 = vector.broadcast %cst_113 : f32 to vector<2x32xf32>
    %401 = vector.shape_cast %393 : vector<2x1xi1> to vector<2x1xi1>
    %402 = vector.broadcast %401 : vector<2x1xi1> to vector<2x32xi1>
    %403 = arith.select %402, %390, %400 : vector<2x32xi1>, vector<2x32xf32>
    %c6_114 = arith.constant 6 : index
    %c0_115 = arith.constant 0 : index
    %c0_116 = arith.constant 0 : index
    %404 = vector.load %arg4[%c6_114, %c0_115, %c0_116] : memref<8x2x32xf32, #tpu.memory_space<vmem>>, vector<1x2x32xf32>
    %405 = vector.shape_cast %404 : vector<1x2x32xf32> to vector<2x32xf32>
    %406 = vector.shape_cast %403 : vector<2x32xf32> to vector<1x2x32xf32>
    tpu.vector_store %arg4[%c6_114, %c0_115, %c0_116], %406 {strides = array<i32>} : memref<8x2x32xf32, #tpu.memory_space<vmem>>, vector<1x2x32xf32>,
    %c7 = arith.constant 7 : index
    %c0_117 = arith.constant 0 : index
    %c0_118 = arith.constant 0 : index
    %c0_119 = arith.constant 0 : index
    %407 = vector.load %arg1[%c7, %c0_117, %c0_118, %c0_119] : memref<8x4x2x32xf32, #tpu.memory_space<vmem>>, vector<1x4x2x32xf32>
    %408 = vector.shape_cast %407 : vector<1x4x2x32xf32> to vector<4x2x32xf32>
    %409 = arith.truncf %396 : vector<2x32xf32> to vector<2x32xbf16>
    %410 = vector.extract_strided_slice %408 {offsets = [0, 0, 0], sizes = [1, 2, 32], strides = [1, 1, 1]} : vector<4x2x32xf32> to vector<1x2x32xf32>
    %411 = vector.shape_cast %410 : vector<1x2x32xf32> to vector<2x32xf32>
    %cst_120 = arith.constant dense<0.000000e+00> : vector<2x32xf32>
    %412 = tpu.matmul %409, %6, %cst_120 {dimension_numbers = #tpu.dot_dimension_numbers<[1], [0], [0], [1], [0, 0, 1, 1], [], []>} : vector<2x32xbf16>, vector<32x32xbf16>, vector<2x32xf32> -> vector<2x32xf32>
    %413 = arith.addf %411, %412 : vector<2x32xf32>
    %414 = vector.extract_strided_slice %408 {offsets = [1, 0, 0], sizes = [1, 2, 32], strides = [1, 1, 1]} : vector<4x2x32xf32> to vector<1x2x32xf32>
    %415 = vector.shape_cast %414 : vector<1x2x32xf32> to vector<2x32xf32>
    %cst_121 = arith.constant dense<0.000000e+00> : vector<2x32xf32>
    %416 = tpu.matmul %409, %8, %cst_121 {dimension_numbers = #tpu.dot_dimension_numbers<[1], [0], [0], [1], [0, 0, 1, 1], [], []>} : vector<2x32xbf16>, vector<32x32xbf16>, vector<2x32xf32> -> vector<2x32xf32>
    %417 = arith.addf %415, %416 : vector<2x32xf32>
    %418 = vector.extract_strided_slice %408 {offsets = [2, 0, 0], sizes = [1, 2, 32], strides = [1, 1, 1]} : vector<4x2x32xf32> to vector<1x2x32xf32>
    %419 = vector.shape_cast %418 : vector<1x2x32xf32> to vector<2x32xf32>
    %cst_122 = arith.constant dense<0.000000e+00> : vector<2x32xf32>
    %420 = tpu.matmul %409, %10, %cst_122 {dimension_numbers = #tpu.dot_dimension_numbers<[1], [0], [0], [1], [0, 0, 1, 1], [], []>} : vector<2x32xbf16>, vector<32x32xbf16>, vector<2x32xf32> -> vector<2x32xf32>
    %421 = arith.addf %419, %420 : vector<2x32xf32>
    %422 = vector.extract_strided_slice %408 {offsets = [3, 0, 0], sizes = [1, 2, 32], strides = [1, 1, 1]} : vector<4x2x32xf32> to vector<1x2x32xf32>
    %423 = vector.shape_cast %422 : vector<1x2x32xf32> to vector<2x32xf32>
    %cst_123 = arith.constant dense<0.000000e+00> : vector<2x32xf32>
    %424 = tpu.matmul %409, %12, %cst_123 {dimension_numbers = #tpu.dot_dimension_numbers<[1], [0], [0], [1], [0, 0, 1, 1], [], []>} : vector<2x32xbf16>, vector<32x32xbf16>, vector<2x32xf32> -> vector<2x32xf32>
    %425 = arith.addf %423, %424 : vector<2x32xf32>
    %426 = arith.negf %413 : vector<2x32xf32>
    %427 = math.exp %426 : vector<2x32xf32>
    %cst_124 = arith.constant 1.000000e+00 : f32
    %428 = vector.broadcast %cst_124 : f32 to vector<2x32xf32>
    %429 = arith.addf %428, %427 : vector<2x32xf32>
    %430 = arith.divf %428, %429 : vector<2x32xf32>
    %431 = arith.negf %417 : vector<2x32xf32>
    %432 = math.exp %431 : vector<2x32xf32>
    %cst_125 = arith.constant 1.000000e+00 : f32
    %433 = vector.broadcast %cst_125 : f32 to vector<2x32xf32>
    %434 = arith.addf %433, %432 : vector<2x32xf32>
    %435 = arith.divf %433, %434 : vector<2x32xf32>
    %436 = math.tanh %421 : vector<2x32xf32>
    %437 = arith.negf %425 : vector<2x32xf32>
    %438 = math.exp %437 : vector<2x32xf32>
    %cst_126 = arith.constant 1.000000e+00 : f32
    %439 = vector.broadcast %cst_126 : f32 to vector<2x32xf32>
    %440 = arith.addf %439, %438 : vector<2x32xf32>
    %441 = arith.divf %439, %440 : vector<2x32xf32>
    %442 = arith.mulf %435, %399 : vector<2x32xf32>
    %443 = arith.mulf %430, %436 : vector<2x32xf32>
    %444 = arith.addf %442, %443 : vector<2x32xf32>
    %445 = math.tanh %444 : vector<2x32xf32>
    %446 = arith.mulf %441, %445 : vector<2x32xf32>
    %c7_i32 = arith.constant 7 : i32
    %447 = arith.addi %4, %c7_i32 : i32
    %448 = vector.broadcast %447 : i32 to vector<2x1xi32>
    %449 = arith.cmpi sgt, %3, %448 : vector<2x1xi32>
    %450 = vector.shape_cast %449 : vector<2x1xi1> to vector<2x1xi1>
    %451 = vector.broadcast %450 : vector<2x1xi1> to vector<2x32xi1>
    %452 = arith.select %451, %446, %396 : vector<2x32xi1>, vector<2x32xf32>
    %453 = vector.shape_cast %449 : vector<2x1xi1> to vector<2x1xi1>
    %454 = vector.broadcast %453 : vector<2x1xi1> to vector<2x32xi1>
    %455 = arith.select %454, %444, %399 : vector<2x32xi1>, vector<2x32xf32>
    %cst_127 = arith.constant 0.000000e+00 : f32
    %456 = vector.broadcast %cst_127 : f32 to vector<2x32xf32>
    %457 = vector.shape_cast %449 : vector<2x1xi1> to vector<2x1xi1>
    %458 = vector.broadcast %457 : vector<2x1xi1> to vector<2x32xi1>
    %459 = arith.select %458, %446, %456 : vector<2x32xi1>, vector<2x32xf32>
    %c7_128 = arith.constant 7 : index
    %c0_129 = arith.constant 0 : index
    %c0_130 = arith.constant 0 : index
    %460 = vector.load %arg4[%c7_128, %c0_129, %c0_130] : memref<8x2x32xf32, #tpu.memory_space<vmem>>, vector<1x2x32xf32>
    %461 = vector.shape_cast %460 : vector<1x2x32xf32> to vector<2x32xf32>
    %462 = vector.shape_cast %459 : vector<2x32xf32> to vector<1x2x32xf32>
    tpu.vector_store %arg4[%c7_128, %c0_129, %c0_130], %462 {strides = array<i32>} : memref<8x2x32xf32, #tpu.memory_space<vmem>>, vector<1x2x32xf32>,
    %c0_131 = arith.constant 0 : index
    %c0_132 = arith.constant 0 : index
    %463 = vector.load %arg5[%c0_131, %c0_132] : memref<2x32xf32, #tpu.memory_space<vmem>>, vector<2x32xf32>
    tpu.vector_store %arg5[%c0_131, %c0_132], %452 {strides = array<i32>} : memref<2x32xf32, #tpu.memory_space<vmem>>, vector<2x32xf32>,
    %c0_133 = arith.constant 0 : index
    %c0_134 = arith.constant 0 : index
    %464 = vector.load %arg6[%c0_133, %c0_134] : memref<2x32xf32, #tpu.memory_space<vmem>>, vector<2x32xf32>
    tpu.vector_store %arg6[%c0_133, %c0_134], %455 {strides = array<i32>} : memref<2x32xf32, #tpu.memory_space<vmem>>, vector<2x32xf32>,
    return
  }
  func.func @transform_0(%arg0: i32) -> (i32, i32, i32, i32) {
    %c0_i32 = arith.constant 0 : i32
    %c0_i32_0 = arith.constant 0 : i32
    %c0_i32_1 = arith.constant 0 : i32
    %c0_i32_2 = arith.constant 0 : i32
    return %arg0, %c0_i32, %c0_i32_0, %c0_i32_1 : i32, i32, i32, i32
  }
  func.func @transform_1(%arg0: i32) -> (i32, i32) {
    %c0_i32 = arith.constant 0 : i32
    %c0_i32_0 = arith.constant 0 : i32
    %c0_i32_1 = arith.constant 0 : i32
    return %c0_i32, %c0_i32_0 : i32, i32
  }
  func.func @transform_2(%arg0: i32) -> (i32, i32, i32) {
    %c0_i32 = arith.constant 0 : i32
    %c0_i32_0 = arith.constant 0 : i32
    %c0_i32_1 = arith.constant 0 : i32
    %c0_i32_2 = arith.constant 0 : i32
    return %c0_i32, %c0_i32_0, %c0_i32_1 : i32, i32, i32
  }
  func.func @transform_3(%arg0: i32) -> (i32, i32, i32) {
    %c0_i32 = arith.constant 0 : i32
    %c0_i32_0 = arith.constant 0 : i32
    %c0_i32_1 = arith.constant 0 : i32
    return %arg0, %c0_i32, %c0_i32_0 : i32, i32, i32
  }
}

</mosaic_0001>

<bundles_post_ra>
// kernel: tpu_custom_call.1
= control target key start
LH: loop header
LB: loop body
LE: loop exit
PB: predicated region body
PF: predicated region fallthrough
CT: control target
= control target key end

     0   :  { %8 = vsyncpa [#allocation5], 0  ;;  %s1873_s0 = inlined_call_operand.hbm [shape: f32[8,4,2,32], index: 0, kind: input, shape index: {}]   ;;  %s1874_s1 = inlined_call_operand.vmem [shape: s32[2,1], index: 1, kind: input, shape index: {}]   ;;  %s1875_s2 = inlined_call_operand.hbm [shape: bf16[4,32,32], index: 2, kind: input, shape index: {}]   ;;  %s1876_s3 = inlined_call_operand.hbm [shape: f32[8,2,32], index: 3, kind: output, shape index: {}]  }
   0x1   :  { %9 = vsyncpa [#allocation8], 0 }
   0x2   :  { %10 = vsyncpa [#allocation6], 0  ;;  %s15_s14 = sshll.u32 %s1873_s0, 4  ;;  %s1597_s15 = smov [#allocation4]   ;;  %s16_s14 = int_to_ptr.hbm [resolvable:$true] %s15_s14 }
   0x3   :  { %s17_s16 = sshll.u32 %s1597_s15, 4  ;;  %s30_s19 = sshll.u32 %s1875_s2, 4  ;;  %s18_s16 = int_to_ptr.vmem [resolvable:$true] %s17_s16  ;;  %s31_s19 = int_to_ptr.hbm [resolvable:$true] %s30_s19 }
   0x4   :  { %s1598_s20 = smov 32   ;;  %s1599_s21 = smov 2  }
   0x5   :  { %23 = dma.hbm_to_vmem [thread:$0]  %s16_s14, 1024, %s18_s16, [#allocation5], %s1598_s20, %s1598_s20, %s1599_s21  }
   0x6   :  { %s1600_s22 = smov [#allocation7]   ;;  %s1601_s24 = smov 64  }
   0x7   :  { %s32_s23 = sshll.u32 %s1600_s22, 4  ;;  %s1602_s0 = smov 4   ;;  %s33_s23 = int_to_ptr.vmem [resolvable:$true] %s32_s23 }
   0x8   :  { %38 = dma.hbm_to_vmem [thread:$0]  %s31_s19, 1024, %s33_s23, [#allocation8], %s1601_s24, %s1601_s24, %s1602_s0  }
   0x9   :  { %1591 = dma.done.wait [#allocation5], 1024  }
   0xa   :  { %1592 = vsyncadd [#allocation5], 4294966272 }
   0xb   :  { %1593 = dma.done.wait [#allocation8], 1024  }
   0xc   :  { %1594 = vsyncadd [#allocation8], 4294966272  ;;  %vm52_vm0 = vcmask 254976   ;;  %v1603_v0 = vmov 0.0   ;;  %v1604_v1 = vmov 0   ;;  %v1640_v2 = vld [vmem:[#allocation7 + $0x8] sm:$0xff] }
   0xd   :  { %53 = vst.msk [vmem:[#allocation2] sm:$0x3] %vm52_vm0, %v1603_v0  ;;  %1380 = vset.pattern.permute.xlu0 %v1604_v1  ;;  %1381 = vset.pattern.permute.xlu1 %v1604_v1  ;;  %v1642_v3 = vld [vmem:[#allocation7 + $0x18] sm:$0xff]  ;;  %v1646_v5 = vld [vmem:[#allocation7] sm:$0xff]  ;;  %v1650_v6 = vld [vmem:[#allocation7 + $0x10] sm:$0xff]  ;;  %vm95_vm2 = vcmask 261120  }
   0xe   :  { %54 = vst.msk [vmem:[#allocation3] sm:$0x3] %vm52_vm0, %v1603_v0  ;;  %1382 = vset.pattern.permute.xlu2 %v1604_v1  ;;  %v1644_v4 = vld [vmem:[#allocation7 + $0x38] sm:$0xff]  ;;  %105 = vmatpush.bf16.msra.mxu0 %v1640_v2  ;;  %v1654_v8 = vld [vmem:[#allocation7 + $0x28] sm:$0xff]  ;;  %v1657_v9 = vld [vmem:[#allocation7 + $0x30] sm:$0xff]  ;;  %s1261_s29 = sshll.u32 %s1876_s3, 4  ;;  %s1262_s29 = int_to_ptr.hbm [resolvable:$true] %s1261_s29 }
   0xf   :  { %131 = vmatpush.bf16.msra.mxu1 %v1642_v3  ;;  %183 = vmatpush.bf16.msra.mxu3 %v1644_v4  ;;  %v1662_v10 = vld [vmem:[%s1874_s1] sm:$0x3]  ;;  %v1665_v11 = vld [vmem:[#allocation7 + $0x20] sm:$0xff]  ;;  %s1605_s1 = smov [#allocation9]  }
  0x10   :  { %157 = vmatpush.bf16.msra.mxu2 %v1654_v8  ;;  %vm255_vm1 = vcmp.gt.s32.totalorder %v1662_v10, 0  ;;  %vm396_vm3 = vcmp.gt.s32.totalorder %v1662_v10, 1  ;;  %vm1101_vm4 = vcmp.gt.s32.totalorder %v1662_v10, 6  ;;  %v78_v16 = vld [vmem:[#allocation4] sm:$0x3]  ;;  %s1259_s26 = sshll.u32 %s1605_s1, 4  ;;  %s1260_s26 = int_to_ptr.vmem [resolvable:$true] %s1259_s26 }
  0x11   :  { %v256_v13 = vsel %vm255_vm1, 1, %v1604_v1  ;;  %v397_v14 = vsel %vm396_vm3, 1, %v1604_v1  ;;  %v1102_v15 = vsel %vm1101_vm4, 1, %v1604_v1  ;;  %v79_v17 = vld [vmem:[#allocation4 + $0x2] sm:$0x3]  ;;  %vm537_vm4 = vcmp.gt.s32.totalorder %v1662_v10, 2 }
  0x12   :  { %106 = vmatpush.bf16.msra.mxu0 %v1646_v5  ;;  %258 = vperm.xlu0 %1380, %v256_v13   ;;  %v81_v24 = vld [vmem:[#allocation4 + $0x6] sm:$0x3]  ;;  %v80_v35 = vld [vmem:[#allocation4 + $0x4] sm:$0x3] }
  0x13   :  { %132 = vmatpush.bf16.msra.mxu1 %v1650_v6  ;;  %184 = vmatpush.bf16.msra.mxu3 %v1657_v9 }
  0x14   :  { %v1652_v7 = vld [vmem:[#allocation2] sm:$0x3]  ;;  %158 = vmatpush.bf16.msra.mxu2 %v1665_v11 }
  0x15   :  { %v82_v12 = vpack.c.bf16 %v1652_v7, %v1652_v7  ;;  %v77_v60 = vld [vmem:[#allocation3] sm:$0x3] }
  0x16   :  { %281 = vmatpush.bf16.msrb.mxu0 %v1640_v2 }
  0x17   :  { %1283 = vmatmul.msk.bf16.vlgmr.msra.gmra.mxu0 %vm95_vm2, %v82_v12  ;;  %1292 = vmatmul.msk.bf16.vlgmr.msra.gmra.mxu1 %vm95_vm2, %v82_v12 }
  0x18   :  { %1310 = vmatmul.msk.bf16.vlgmr.msra.gmra.mxu3 %vm95_vm2, %v82_v12  ;;  %295 = vmatpush.bf16.msrb.mxu1 %v1642_v3 }
  0x19   :  { %1301 = vmatmul.msk.bf16.vlgmr.msra.gmra.mxu2 %vm95_vm2, %v82_v12  ;;  %323 = vmatpush.bf16.msrb.mxu3 %v1644_v4 }
  0x1a   :  { %282 = vmatpush.bf16.msrb.mxu0 %v1646_v5  ;;  %309 = vmatpush.bf16.msrb.mxu2 %v1654_v8 }
  0x1b   :  { %399 = vperm.xlu0 %1380, %v397_v14  }
  0x1c   :  { %296 = vmatpush.bf16.msrb.mxu1 %v1650_v6 }
  0x1d   :  { %324 = vmatpush.bf16.msrb.mxu3 %v1657_v9 }
  0x1e   :  { %422 = vmatpush.bf16.msra.mxu0 %v1640_v2  ;;  %310 = vmatpush.bf16.msrb.mxu2 %v1665_v11 }
  0x20   :  { %436 = vmatpush.bf16.msra.mxu1 %v1642_v3 }
  0x21   :  { %464 = vmatpush.bf16.msra.mxu3 %v1644_v4 }
  0x22   :  { %423 = vmatpush.bf16.msra.mxu0 %v1646_v5  ;;  %450 = vmatpush.bf16.msra.mxu2 %v1654_v8 }
  0x23   :  { %1104 = vperm.xlu0 %1380, %v1102_v15  }
  0x24   :  { %437 = vmatpush.bf16.msra.mxu1 %v1650_v6 }
  0x25   :  { %465 = vmatpush.bf16.msra.mxu3 %v1657_v9 }
  0x26   :  { %451 = vmatpush.bf16.msra.mxu2 %v1665_v11 }
  0x84   :  { %v259_v14 = vpop.permute.xlu0 %258 }
  0x85   :  { %vm260_vm13 = vcmp.eq.s32.totalorder %v259_v14, 1 }
  0x94   :  { %v108_v18 = vpop.f32.mrf.mxu0  ;;  %v134_v19 = vpop.f32.mrf.mxu1 }
  0x95   :  { %v112_v20 = vadd.f32 %v108_v18, %v78_v16  ;;  %v138_v21 = vadd.f32 %v134_v19, %v79_v17 }
  0x97   :  { %v1311_v22 = vmul.f32 -1.442695, %v112_v20  ;;  %v1312_v23 = vmul.f32 -1.442695, %v138_v21 }
  0x99   :  { %1383 = vpow2.f32 %v1311_v22 }
  0x9a   :  { %1385 = vpow2.f32 %v1312_v23 }
  0x9b   :  { %v186_v25 = vpop.f32.mrf.mxu3 }
  0x9c   :  { %v190_v26 = vadd.f32 %v186_v25, %v81_v24  ;;  %v110_v27 = vpop.f32.mrf.mxu0  ;;  %v136_v28 = vpop.f32.mrf.mxu1 }
  0x9d   :  { %v160_v29 = vpop.f32.mrf.mxu2 }
  0x9e   :  { %v1313_v30 = vmul.f32 -1.442695, %v190_v26  ;;  %v164_v39 = vadd.f32 %v160_v29, %v80_v35 }
  0x9f   :  { %v1384_v31 = vpop.eup %1383 }
  0xa0   :  { %v1386_v32 = vpop.eup %1385  ;;  %v194_v33 = vadd.f32 1.0, %v1384_v31  ;;  %1387 = vpow2.f32 %v1313_v30  ;;  %v268_v30 = vld [vmem:[#allocation4 + $0xa] sm:$0x3] }
  0xa1   :  { %v213_v34 = vadd.f32 1.0, %v1386_v32 }
  0xa2   :  { %1389 = vrcp.f32 %v194_v33  ;;  %v206_v47 = vand.u32 2147483648, %v194_v33  ;;  %v204_v49 = vand.u32 2147483647, %v194_v33  ;;  %vm200_vm7 = vweird.f32 %v194_v33 }
  0xa3   :  { %1391 = vrcp.f32 %v213_v34  ;;  %v188_v36 = vpop.f32.mrf.mxu3  ;;  %v225_v50 = vand.u32 2147483648, %v213_v34  ;;  %v223_v52 = vand.u32 2147483647, %v213_v34  ;;  %vm219_vm9 = vweird.f32 %v213_v34 }
  0xa4   :  { %v207_v57 = vor.u32 1.1754944e-38, %v206_v47  ;;  %vm205_vm10 = vcmp.eq.f32.partialorder %v204_v49, 8.507059e+37 }
  0xa5   :  { %v162_v37 = vpop.f32.mrf.mxu2  ;;  %v226_v61 = vor.u32 1.1754944e-38, %v225_v50  ;;  %vm224_vm12 = vcmp.eq.f32.partialorder %v223_v52, 8.507059e+37  ;;  %v269_v50 = vld [vmem:[#allocation4 + $0xc] sm:$0x3]  ;;  %v538_v52 = vsel %vm537_vm4, 1, %v1604_v1 }
  0xa6   :  { %v1388_v38 = vpop.eup %1387  ;;  %v270_v37 = vld [vmem:[#allocation4 + $0xe] sm:$0x3]  ;;  %540 = vperm.xlu1 %1381, %v538_v52   ;;  %v411_v52 = vld [vmem:[#allocation4 + $0x16] sm:$0x3] }
  0xa7   :  { %v233_v40 = vadd.f32 1.0, %v1388_v38 }
  0xa8   :  { %v1390_v41 = vpop.eup %1389 }
  0xa9   :  { %v1392_v42 = vpop.eup %1391  ;;  %v196_v43 = vmul.f32 %v1390_v41, %v194_v33  ;;  %1393 = vrcp.f32 %v233_v40  ;;  %vm201_vm5 = vweird.f32 %v1390_v41  ;;  %v245_v19 = vand.u32 2147483648, %v233_v40 }
  0xaa   :  { %v215_v44 = vmul.f32 %v1392_v42, %v213_v34  ;;  %1395 = vtanh.f32 %v164_v39  ;;  %vm220_vm6 = vweird.f32 %v1392_v42  ;;  %vm202_vm8 = vmor %vm200_vm7, %vm201_vm5  ;;  %vm239_vm15 = vweird.f32 %v233_v40 }
  0xab   :  { %v197_v45 = vsub.f32 1.0, %v196_v43  ;;  %vm221_vm11 = vmor %vm219_vm9, %vm220_vm6  ;;  %v243_v21 = vand.u32 2147483647, %v233_v40  ;;  %v246_v23 = vor.u32 1.1754944e-38, %v245_v19  ;;  %vm678_vm5 = vcmp.gt.s32.totalorder %v1662_v10, 3 }
  0xac   :  { %v216_v46 = vsub.f32 1.0, %v215_v44 }
  0xad   :  { %v198_v48 = vmul.f32 %v1390_v41, %v197_v45  ;;  %vm244_vm3 = vcmp.eq.f32.partialorder %v243_v21, 8.507059e+37 }
  0xae   :  { %v217_v51 = vmul.f32 %v1392_v42, %v216_v46 }
  0xaf   :  { %v1394_v53 = vpop.eup %1393  ;;  %v199_v54 = vadd.f32 %v1390_v41, %v198_v48 }
  0xb0   :  { %v1396_v55 = vpop.eup %1395  ;;  %v235_v56 = vmul.f32 %v1394_v53, %v233_v40  ;;  %v218_v58 = vadd.f32 %v1392_v42, %v217_v51  ;;  %vm240_vm14 = vweird.f32 %v1394_v53 }
  0xb1   :  { %v203_v59 = vsel %vm202_vm8, %v1390_v41, %v199_v54  ;;  %vm241_vm1 = vmor %vm239_vm15, %vm240_vm14 }
  0xb2   :  { %v236_v62 = vsub.f32 1.0, %v235_v56  ;;  %v208_v63 = vsel %vm205_vm10, %v207_v57, %v203_v59  ;;  %v222_v0 = vsel %vm221_vm11, %v1392_v42, %v218_v58 }
  0xb3   :  { %v250_v12 = vmul.f32 %v1396_v55, %v208_v63  ;;  %v227_v13 = vsel %vm224_vm12, %v226_v61, %v222_v0 }
  0xb4   :  { %v237_v15 = vmul.f32 %v1394_v53, %v236_v62  ;;  %v249_v16 = vmul.f32 %v227_v13, %v77_v60  ;;  %v679_v62 = vsel %vm678_vm5, 1, %v1604_v1 }
  0xb5   :  { %681 = vperm.xlu1 %1381, %v679_v62  }
  0xb6   :  { %v251_v17 = vadd.f32 %v250_v12, %v249_v16  ;;  %v238_v18 = vadd.f32 %v1394_v53, %v237_v15 }
  0xb8   :  { %1397 = vtanh.f32 %v251_v17  ;;  %v1700_v20 = vsel %vm260_vm13, %v251_v17, %v77_v60  ;;  %v242_v22 = vsel %vm241_vm1, %v1394_v53, %v238_v18 }
  0xb9   :  { %v247_v25 = vsel %vm244_vm3, %v246_v23, %v242_v22 }
  0xbe   :  { %v1398_v24 = vpop.eup %1397 }
  0xbf   :  { %v253_v26 = vmul.f32 %v1398_v24, %v247_v25 }
  0xc1   :  { %v1704_v27 = vsel %vm260_vm13, %v253_v26, %v1652_v7  ;;  %v263_v28 = vsel %vm260_vm13, %v253_v26, 0.0  ;;  %v267_v7 = vld [vmem:[#allocation4 + $0x8] sm:$0x3]  ;;  %vm1242_vm13 = vcmp.gt.s32.totalorder %v1662_v10, 7 }
  0xc2   :  { %265 = vst.msk [vmem:[#allocation9] sm:$0x3] %vm52_vm0, %v263_v28  ;;  %v271_v29 = vpack.c.bf16 %v1704_v27, %v1704_v27 }
  0xc4   :  { %1314 = vmatmul.msk.bf16.vlgmr.msrb.gmra.mxu0 %vm95_vm2, %v271_v29  ;;  %1315 = vmatmul.msk.bf16.vlgmr.msrb.gmra.mxu1 %vm95_vm2, %v271_v29 }
  0xc5   :  { %1316 = vmatmul.msk.bf16.vlgmr.msrb.gmra.mxu2 %vm95_vm2, %v271_v29  ;;  %1317 = vmatmul.msk.bf16.vlgmr.msrb.gmra.mxu3 %vm95_vm2, %v271_v29 }
  0xc6   :  { %563 = vmatpush.bf16.msrb.mxu0 %v1640_v2  ;;  %577 = vmatpush.bf16.msrb.mxu1 %v1642_v3 }
  0xc7   :  { %605 = vmatpush.bf16.msrb.mxu3 %v1644_v4  ;;  %591 = vmatpush.bf16.msrb.mxu2 %v1654_v8 }
  0xca   :  { %564 = vmatpush.bf16.msrb.mxu0 %v1646_v5  ;;  %578 = vmatpush.bf16.msrb.mxu1 %v1650_v6 }
  0xcb   :  { %592 = vmatpush.bf16.msrb.mxu2 %v1665_v11  ;;  %606 = vmatpush.bf16.msrb.mxu3 %v1657_v9 }
 0x141   :  { %v284_v31 = vpop.f32.mrf.mxu0  ;;  %v298_v32 = vpop.f32.mrf.mxu1 }
 0x142   :  { %v288_v33 = vadd.f32 %v284_v31, %v267_v7  ;;  %v302_v34 = vadd.f32 %v298_v32, %v268_v30  ;;  %v1243_v31 = vsel %vm1242_vm13, 1, %v1604_v1  ;;  %v400_v32 = vpop.permute.xlu0 %399 }
 0x143   :  { %vm401_vm15 = vcmp.eq.s32.totalorder %v400_v32, 1  ;;  %1245 = vperm.xlu1 %1381, %v1243_v31  }
 0x144   :  { %v1318_v35 = vmul.f32 -1.442695, %v288_v33  ;;  %v1319_v36 = vmul.f32 -1.442695, %v302_v34 }
 0x146   :  { %1399 = vpow2.f32 %v1318_v35 }
 0x147   :  { %1401 = vpow2.f32 %v1319_v36 }
 0x148   :  { %v312_v38 = vpop.f32.mrf.mxu2  ;;  %v326_v39 = vpop.f32.mrf.mxu3 }
 0x149   :  { %v330_v40 = vadd.f32 %v326_v39, %v270_v37  ;;  %v286_v41 = vpop.f32.mrf.mxu0  ;;  %v300_v42 = vpop.f32.mrf.mxu1  ;;  %v316_v55 = vadd.f32 %v312_v38, %v269_v50 }
 0x14b   :  { %v1320_v43 = vmul.f32 -1.442695, %v330_v40 }
 0x14c   :  { %v1400_v44 = vpop.eup %1399 }
 0x14d   :  { %v1402_v45 = vpop.eup %1401  ;;  %v334_v46 = vadd.f32 1.0, %v1400_v44  ;;  %1403 = vpow2.f32 %v1320_v43 }
 0x14e   :  { %v353_v47 = vadd.f32 1.0, %v1402_v45  ;;  %v409_v45 = vld [vmem:[#allocation4 + $0x12] sm:$0x3] }
 0x14f   :  { %1405 = vrcp.f32 %v334_v46  ;;  %v346_v61 = vand.u32 2147483648, %v334_v46  ;;  %v344_v12 = vand.u32 2147483647, %v334_v46  ;;  %vm340_vm8 = vweird.f32 %v334_v46 }
 0x150   :  { %1407 = vrcp.f32 %v353_v47  ;;  %v314_v48 = vpop.f32.mrf.mxu2  ;;  %v328_v49 = vpop.f32.mrf.mxu3  ;;  %v365_v63 = vand.u32 2147483648, %v353_v47  ;;  %v363_v14 = vand.u32 2147483647, %v353_v47  ;;  %vm359_vm9 = vweird.f32 %v353_v47 }
 0x151   :  { %v347_v17 = vor.u32 1.1754944e-38, %v346_v61  ;;  %vm345_vm12 = vcmp.eq.f32.partialorder %v344_v12, 8.507059e+37  ;;  %v410_v12 = vld [vmem:[#allocation4 + $0x14] sm:$0x3] }
 0x152   :  { %v366_v21 = vor.u32 1.1754944e-38, %v365_v63  ;;  %vm364_vm14 = vcmp.eq.f32.partialorder %v363_v14, 8.507059e+37 }
 0x153   :  { %v1404_v51 = vpop.eup %1403 }
 0x154   :  { %v373_v53 = vadd.f32 1.0, %v1404_v51 }
 0x155   :  { %v1406_v54 = vpop.eup %1405 }
 0x156   :  { %v1408_v56 = vpop.eup %1407  ;;  %v336_v57 = vmul.f32 %v1406_v54, %v334_v46  ;;  %1409 = vrcp.f32 %v373_v53  ;;  %vm341_vm6 = vweird.f32 %v1406_v54  ;;  %v385_v35 = vand.u32 2147483648, %v373_v53 }
 0x157   :  { %v355_v58 = vmul.f32 %v1408_v56, %v353_v47  ;;  %1411 = vtanh.f32 %v316_v55  ;;  %vm360_vm7 = vweird.f32 %v1408_v56  ;;  %vm342_vm10 = vmor %vm340_vm8, %vm341_vm6  ;;  %vm379_vm3 = vweird.f32 %v373_v53 }
 0x158   :  { %v337_v59 = vsub.f32 1.0, %v336_v57  ;;  %vm361_vm11 = vmor %vm359_vm9, %vm360_vm7  ;;  %v383_v37 = vand.u32 2147483647, %v373_v53  ;;  %v386_v39 = vor.u32 1.1754944e-38, %v385_v35 }
 0x159   :  { %v356_v60 = vsub.f32 1.0, %v355_v58 }
 0x15a   :  { %v338_v0 = vmul.f32 %v1406_v54, %v337_v59  ;;  %vm384_vm5 = vcmp.eq.f32.partialorder %v383_v37, 8.507059e+37 }
 0x15b   :  { %v357_v13 = vmul.f32 %v1408_v56, %v356_v60 }
 0x15c   :  { %v1410_v15 = vpop.eup %1409  ;;  %v339_v16 = vadd.f32 %v1406_v54, %v338_v0 }
 0x15d   :  { %v358_v18 = vadd.f32 %v1408_v56, %v357_v13  ;;  %v375_v19 = vmul.f32 %v1410_v15, %v373_v53  ;;  %v1412_v23 = vpop.eup %1411  ;;  %vm380_vm1 = vweird.f32 %v1410_v15 }
 0x15e   :  { %v343_v22 = vsel %vm342_vm10, %v1406_v54, %v339_v16  ;;  %vm381_vm4 = vmor %vm379_vm3, %vm380_vm1 }
 0x15f   :  { %v348_v24 = vsel %vm345_vm12, %v347_v17, %v343_v22  ;;  %v362_v25 = vsel %vm361_vm11, %v1408_v56, %v358_v18  ;;  %v376_v26 = vsub.f32 1.0, %v375_v19 }
 0x160   :  { %v367_v28 = vsel %vm364_vm14, %v366_v21, %v362_v25  ;;  %v390_v29 = vmul.f32 %v1412_v23, %v348_v24 }
 0x161   :  { %v389_v7 = vmul.f32 %v367_v28, %v1700_v20  ;;  %v377_v30 = vmul.f32 %v1410_v15, %v376_v26 }
 0x163   :  { %v391_v33 = vadd.f32 %v390_v29, %v389_v7  ;;  %v378_v34 = vadd.f32 %v1410_v15, %v377_v30 }
 0x165   :  { %1413 = vtanh.f32 %v391_v33  ;;  %v1731_v36 = vsel %vm401_vm15, %v391_v33, %v1700_v20  ;;  %v382_v38 = vsel %vm381_vm4, %v1410_v15, %v378_v34 }
 0x166   :  { %v387_v41 = vsel %vm384_vm5, %v386_v39, %v382_v38  ;;  %vm819_vm5 = vcmp.gt.s32.totalorder %v1662_v10, 4 }
 0x16b   :  { %v1414_v40 = vpop.eup %1413 }
 0x16c   :  { %v393_v42 = vmul.f32 %v1414_v40, %v387_v41 }
 0x16e   :  { %v1735_v43 = vsel %vm401_vm15, %v393_v42, %v1704_v27  ;;  %v404_v44 = vsel %vm401_vm15, %v393_v42, 0.0  ;;  %v408_v27 = vld [vmem:[#allocation4 + $0x10] sm:$0x3] }
 0x16f   :  { %406 = vst.msk [vmem:[#allocation9 + $0x2] sm:$0x3] %vm52_vm0, %v404_v44  ;;  %v412_v20 = vpack.c.bf16 %v1735_v43, %v1735_v43  ;;  %v541_v44 = vpop.permute.xlu1 %540 }
 0x170   :  { %vm542_vm14 = vcmp.eq.s32.totalorder %v541_v44, 1 }
 0x171   :  { %1321 = vmatmul.msk.bf16.vlgmr.msra.gmra.mxu0 %vm95_vm2, %v412_v20  ;;  %1322 = vmatmul.msk.bf16.vlgmr.msra.gmra.mxu1 %vm95_vm2, %v412_v20 }
 0x172   :  { %1323 = vmatmul.msk.bf16.vlgmr.msra.gmra.mxu2 %vm95_vm2, %v412_v20  ;;  %1324 = vmatmul.msk.bf16.vlgmr.msra.gmra.mxu3 %vm95_vm2, %v412_v20 }
 0x173   :  { %704 = vmatpush.bf16.msra.mxu0 %v1640_v2  ;;  %718 = vmatpush.bf16.msra.mxu1 %v1642_v3 }
 0x174   :  { %746 = vmatpush.bf16.msra.mxu3 %v1644_v4  ;;  %732 = vmatpush.bf16.msra.mxu2 %v1654_v8 }
 0x177   :  { %705 = vmatpush.bf16.msra.mxu0 %v1646_v5  ;;  %719 = vmatpush.bf16.msra.mxu1 %v1650_v6 }
 0x178   :  { %733 = vmatpush.bf16.msra.mxu2 %v1665_v11  ;;  %747 = vmatpush.bf16.msra.mxu3 %v1657_v9 }
 0x1ee   :  { %v425_v46 = vpop.f32.mrf.mxu0  ;;  %v439_v47 = vpop.f32.mrf.mxu1 }
 0x1ef   :  { %v429_v48 = vadd.f32 %v425_v46, %v408_v27  ;;  %v443_v49 = vadd.f32 %v439_v47, %v409_v45 }
 0x1f1   :  { %v1325_v50 = vmul.f32 -1.442695, %v429_v48  ;;  %v1326_v51 = vmul.f32 -1.442695, %v443_v49 }
 0x1f3   :  { %1415 = vpow2.f32 %v1325_v50 }
 0x1f4   :  { %1417 = vpow2.f32 %v1326_v51 }
 0x1f5   :  { %v453_v53 = vpop.f32.mrf.mxu2  ;;  %v467_v54 = vpop.f32.mrf.mxu3 }
 0x1f6   :  { %v471_v55 = vadd.f32 %v467_v54, %v411_v52  ;;  %v427_v56 = vpop.f32.mrf.mxu0  ;;  %v441_v57 = vpop.f32.mrf.mxu1  ;;  %v457_v16 = vadd.f32 %v453_v53, %v410_v12 }
 0x1f7   :  { %v550_v57 = vld [vmem:[#allocation4 + $0x1a] sm:$0x3] }
 0x1f8   :  { %v1327_v58 = vmul.f32 -1.442695, %v471_v55 }
 0x1f9   :  { %v1416_v59 = vpop.eup %1415 }
 0x1fa   :  { %v1418_v60 = vpop.eup %1417  ;;  %v475_v61 = vadd.f32 1.0, %v1416_v59  ;;  %1419 = vpow2.f32 %v1327_v58 }
 0x1fb   :  { %v494_v62 = vadd.f32 1.0, %v1418_v60 }
 0x1fc   :  { %1421 = vrcp.f32 %v475_v61  ;;  %v487_v23 = vand.u32 2147483648, %v475_v61  ;;  %v485_v25 = vand.u32 2147483647, %v475_v61  ;;  %vm481_vm8 = vweird.f32 %v475_v61 }
 0x1fd   :  { %1423 = vrcp.f32 %v494_v62  ;;  %v455_v63 = vpop.f32.mrf.mxu2  ;;  %v469_v0 = vpop.f32.mrf.mxu3  ;;  %v506_v26 = vand.u32 2147483648, %v494_v62  ;;  %v504_v29 = vand.u32 2147483647, %v494_v62  ;;  %vm500_vm10 = vweird.f32 %v494_v62 }
 0x1fe   :  { %v488_v31 = vor.u32 1.1754944e-38, %v487_v23  ;;  %vm486_vm11 = vcmp.eq.f32.partialorder %v485_v25, 8.507059e+37  ;;  %v552_v0 = vld [vmem:[#allocation4 + $0x1e] sm:$0x3]  ;;  %v551_v25 = vld [vmem:[#allocation4 + $0x1c] sm:$0x3] }
 0x1ff   :  { %v507_v35 = vor.u32 1.1754944e-38, %v506_v26  ;;  %vm505_vm13 = vcmp.eq.f32.partialorder %v504_v29, 8.507059e+37 }
 0x200   :  { %v1420_v13 = vpop.eup %1419 }
 0x201   :  { %v514_v14 = vadd.f32 1.0, %v1420_v13 }
 0x202   :  { %v1422_v15 = vpop.eup %1421 }
 0x203   :  { %v1424_v17 = vpop.eup %1423  ;;  %v477_v18 = vmul.f32 %v1422_v15, %v475_v61  ;;  %1425 = vrcp.f32 %v514_v14  ;;  %vm482_vm6 = vweird.f32 %v1422_v15  ;;  %v526_v47 = vand.u32 2147483648, %v514_v14 }
 0x204   :  { %v496_v19 = vmul.f32 %v1424_v17, %v494_v62  ;;  %1427 = vtanh.f32 %v457_v16  ;;  %vm501_vm7 = vweird.f32 %v1424_v17  ;;  %vm483_vm9 = vmor %vm481_vm8, %vm482_vm6  ;;  %vm520_vm1 = vweird.f32 %v514_v14 }
 0x205   :  { %v478_v21 = vsub.f32 1.0, %v477_v18  ;;  %vm502_vm12 = vmor %vm500_vm10, %vm501_vm7  ;;  %v524_v49 = vand.u32 2147483647, %v514_v14  ;;  %v527_v51 = vor.u32 1.1754944e-38, %v526_v47  ;;  %vm960_vm6 = vcmp.gt.s32.totalorder %v1662_v10, 5 }
 0x206   :  { %v497_v22 = vsub.f32 1.0, %v496_v19 }
 0x207   :  { %v479_v24 = vmul.f32 %v1422_v15, %v478_v21  ;;  %vm525_vm4 = vcmp.eq.f32.partialorder %v524_v49, 8.507059e+37 }
 0x208   :  { %v498_v28 = vmul.f32 %v1424_v17, %v497_v22 }
 0x209   :  { %v1426_v7 = vpop.eup %1425  ;;  %v480_v30 = vadd.f32 %v1422_v15, %v479_v24 }
 0x20a   :  { %v516_v32 = vmul.f32 %v1426_v7, %v514_v14  ;;  %v499_v33 = vadd.f32 %v1424_v17, %v498_v28  ;;  %v1428_v37 = vpop.eup %1427  ;;  %vm521_vm15 = vweird.f32 %v1426_v7  ;;  %v820_v28 = vsel %vm819_vm5, 1, %v1604_v1 }
 0x20b   :  { %v484_v34 = vsel %vm483_vm9, %v1422_v15, %v480_v30  ;;  %vm522_vm3 = vmor %vm520_vm1, %vm521_vm15  ;;  %822 = vperm.xlu2 %1382, %v820_v28  }
 0x20c   :  { %v489_v38 = vsel %vm486_vm11, %v488_v31, %v484_v34  ;;  %v517_v39 = vsub.f32 1.0, %v516_v32  ;;  %v503_v40 = vsel %vm502_vm12, %v1424_v17, %v499_v33 }
 0x20d   :  { %v531_v41 = vmul.f32 %v1428_v37, %v489_v38  ;;  %v508_v42 = vsel %vm505_vm13, %v507_v35, %v503_v40  ;;  %v961_v38 = vsel %vm960_vm6, 1, %v1604_v1 }
 0x20e   :  { %v518_v20 = vmul.f32 %v1426_v7, %v517_v39  ;;  %v530_v27 = vmul.f32 %v508_v42, %v1731_v36 }
 0x210   :  { %v532_v45 = vadd.f32 %v531_v41, %v530_v27  ;;  %v519_v46 = vadd.f32 %v1426_v7, %v518_v20 }
 0x212   :  { %1429 = vtanh.f32 %v532_v45  ;;  %v1756_v48 = vsel %vm542_vm14, %v532_v45, %v1731_v36  ;;  %v523_v50 = vsel %vm522_vm3, %v1426_v7, %v519_v46 }
 0x213   :  { %v528_v53 = vsel %vm525_vm4, %v527_v51, %v523_v50  ;;  %963 = vperm.xlu2 %1382, %v961_v38  }
 0x218   :  { %v1430_v52 = vpop.eup %1429 }
 0x219   :  { %v534_v54 = vmul.f32 %v1430_v52, %v528_v53 }
 0x21b   :  { %v1760_v55 = vsel %vm542_vm14, %v534_v54, %v1735_v43  ;;  %v545_v56 = vsel %vm542_vm14, %v534_v54, 0.0  ;;  %v549_v43 = vld [vmem:[#allocation4 + $0x18] sm:$0x3] }
 0x21c   :  { %547 = vst.msk [vmem:[#allocation9 + $0x4] sm:$0x3] %vm52_vm0, %v545_v56  ;;  %v553_v36 = vpack.c.bf16 %v1760_v55, %v1760_v55 }
 0x21e   :  { %1328 = vmatmul.msk.bf16.vlgmr.msrb.gmra.mxu0 %vm95_vm2, %v553_v36  ;;  %1329 = vmatmul.msk.bf16.vlgmr.msrb.gmra.mxu1 %vm95_vm2, %v553_v36 }
 0x21f   :  { %1330 = vmatmul.msk.bf16.vlgmr.msrb.gmra.mxu2 %vm95_vm2, %v553_v36  ;;  %1331 = vmatmul.msk.bf16.vlgmr.msrb.gmra.mxu3 %vm95_vm2, %v553_v36 }
 0x220   :  { %845 = vmatpush.bf16.msrb.mxu0 %v1640_v2  ;;  %859 = vmatpush.bf16.msrb.mxu1 %v1642_v3 }
 0x221   :  { %887 = vmatpush.bf16.msrb.mxu3 %v1644_v4  ;;  %873 = vmatpush.bf16.msrb.mxu2 %v1654_v8 }
 0x224   :  { %846 = vmatpush.bf16.msrb.mxu0 %v1646_v5  ;;  %860 = vmatpush.bf16.msrb.mxu1 %v1650_v6 }
 0x225   :  { %874 = vmatpush.bf16.msrb.mxu2 %v1665_v11  ;;  %888 = vmatpush.bf16.msrb.mxu3 %v1657_v9 }
 0x29b   :  { %v566_v58 = vpop.f32.mrf.mxu0  ;;  %v580_v59 = vpop.f32.mrf.mxu1 }
 0x29c   :  { %v570_v60 = vadd.f32 %v566_v58, %v549_v43  ;;  %v584_v61 = vadd.f32 %v580_v59, %v550_v57  ;;  %v682_v43 = vpop.permute.xlu1 %681 }
 0x29d   :  { %vm683_vm15 = vcmp.eq.s32.totalorder %v682_v43, 1 }
 0x29e   :  { %v1332_v62 = vmul.f32 -1.442695, %v570_v60  ;;  %v1333_v63 = vmul.f32 -1.442695, %v584_v61 }
 0x2a0   :  { %1431 = vpow2.f32 %v1332_v62 }
 0x2a1   :  { %1433 = vpow2.f32 %v1333_v63 }
 0x2a2   :  { %v594_v12 = vpop.f32.mrf.mxu2  ;;  %v608_v13 = vpop.f32.mrf.mxu3 }
 0x2a3   :  { %v612_v14 = vadd.f32 %v608_v13, %v552_v0  ;;  %v568_v15 = vpop.f32.mrf.mxu0  ;;  %v582_v16 = vpop.f32.mrf.mxu1  ;;  %v598_v30 = vadd.f32 %v594_v12, %v551_v25 }
 0x2a4   :  { %v691_v16 = vld [vmem:[#allocation4 + $0x22] sm:$0x3] }
 0x2a5   :  { %v1334_v17 = vmul.f32 -1.442695, %v612_v14 }
 0x2a6   :  { %v1432_v18 = vpop.eup %1431 }
 0x2a7   :  { %v1434_v19 = vpop.eup %1433  ;;  %v616_v21 = vadd.f32 1.0, %v1432_v18  ;;  %1435 = vpow2.f32 %v1334_v17 }
 0x2a8   :  { %v635_v22 = vadd.f32 1.0, %v1434_v19 }
 0x2a9   :  { %1437 = vrcp.f32 %v616_v21  ;;  %v628_v37 = vand.u32 2147483648, %v616_v21  ;;  %v626_v41 = vand.u32 2147483647, %v616_v21  ;;  %vm622_vm9 = vweird.f32 %v616_v21 }
 0x2aa   :  { %1439 = vrcp.f32 %v635_v22  ;;  %v596_v23 = vpop.f32.mrf.mxu2  ;;  %v610_v24 = vpop.f32.mrf.mxu3  ;;  %v647_v39 = vand.u32 2147483648, %v635_v22  ;;  %v645_v44 = vand.u32 2147483647, %v635_v22  ;;  %vm641_vm10 = vweird.f32 %v635_v22 }
 0x2ab   :  { %v629_v10 = vor.u32 1.1754944e-38, %v628_v37  ;;  %vm627_vm13 = vcmp.eq.f32.partialorder %v626_v41, 8.507059e+37 }
 0x2ac   :  { %v648_v47 = vor.u32 1.1754944e-38, %v647_v39  ;;  %vm646_vm14 = vcmp.eq.f32.partialorder %v645_v44, 8.507059e+37 }
 0x2ad   :  { %v1436_v26 = vpop.eup %1435 }
 0x2ae   :  { %v655_v29 = vadd.f32 1.0, %v1436_v26 }
 0x2af   :  { %v1438_v7 = vpop.eup %1437 }
 0x2b0   :  { %v1440_v31 = vpop.eup %1439  ;;  %v618_v32 = vmul.f32 %v1438_v7, %v616_v21  ;;  %1441 = vrcp.f32 %v655_v29  ;;  %vm623_vm7 = vweird.f32 %v1438_v7  ;;  %v667_v59 = vand.u32 2147483648, %v655_v29 }
 0x2b1   :  { %v637_v33 = vmul.f32 %v1440_v31, %v635_v22  ;;  %1443 = vtanh.f32 %v598_v30  ;;  %vm642_vm8 = vweird.f32 %v1440_v31  ;;  %vm624_vm11 = vmor %vm622_vm9, %vm623_vm7  ;;  %vm661_vm3 = vweird.f32 %v655_v29 }
 0x2b2   :  { %v619_v34 = vsub.f32 1.0, %v618_v32  ;;  %vm643_vm12 = vmor %vm641_vm10, %vm642_vm8  ;;  %v665_v61 = vand.u32 2147483647, %v655_v29  ;;  %v668_v63 = vor.u32 1.1754944e-38, %v667_v59 }
 0x2b3   :  { %v638_v35 = vsub.f32 1.0, %v637_v33 }
 0x2b4   :  { %v620_v40 = vmul.f32 %v1438_v7, %v619_v34  ;;  %vm666_vm5 = vcmp.eq.f32.partialorder %v665_v61, 8.507059e+37 }
 0x2b5   :  { %v639_v42 = vmul.f32 %v1440_v31, %v638_v35 }
 0x2b6   :  { %v1442_v20 = vpop.eup %1441  ;;  %v621_v27 = vadd.f32 %v1438_v7, %v620_v40 }
 0x2b7   :  { %v640_v45 = vadd.f32 %v1440_v31, %v639_v42  ;;  %v657_v46 = vmul.f32 %v1442_v20, %v655_v29  ;;  %v1444_v1 = vpop.eup %1443  ;;  %vm662_vm1 = vweird.f32 %v1442_v20 }
 0x2b8   :  { %v625_v49 = vsel %vm624_vm11, %v1438_v7, %v621_v27  ;;  %vm663_vm4 = vmor %vm661_vm3, %vm662_vm1  ;;  %v692_v7 = vld [vmem:[#allocation4 + $0x24] sm:$0x3] }
 0x2b9   :  { %v630_v50 = vsel %vm627_vm13, %v629_v10, %v625_v49  ;;  %v644_v51 = vsel %vm643_vm12, %v1440_v31, %v640_v45  ;;  %v658_v52 = vsub.f32 1.0, %v657_v46 }
 0x2ba   :  { %v649_v53 = vsel %vm646_vm14, %v648_v47, %v644_v51  ;;  %v672_v54 = vmul.f32 %v1444_v1, %v630_v50 }
 0x2bb   :  { %v671_v56 = vmul.f32 %v649_v53, %v1756_v48  ;;  %v659_v36 = vmul.f32 %v1442_v20, %v658_v52 }
 0x2bd   :  { %v673_v57 = vadd.f32 %v672_v54, %v671_v56  ;;  %v660_v58 = vadd.f32 %v1442_v20, %v659_v36  ;;  %v823_v54 = vpop.permute.xlu2 %822 }
 0x2be   :  { %vm824_vm14 = vcmp.eq.s32.totalorder %v823_v54, 1 }
 0x2bf   :  { %1445 = vtanh.f32 %v673_v57  ;;  %v1785_v60 = vsel %vm683_vm15, %v673_v57, %v1756_v48  ;;  %v664_v62 = vsel %vm663_vm4, %v1442_v20, %v660_v58 }
 0x2c0   :  { %v669_v12 = vsel %vm666_vm5, %v668_v63, %v664_v62 }
 0x2c5   :  { %v1446_v0 = vpop.eup %1445 }
 0x2c6   :  { %v675_v13 = vmul.f32 %v1446_v0, %v669_v12 }
 0x2c8   :  { %v1789_v14 = vsel %vm683_vm15, %v675_v13, %v1760_v55  ;;  %v686_v15 = vsel %vm683_vm15, %v675_v13, 0.0  ;;  %v690_v55 = vld [vmem:[#allocation4 + $0x20] sm:$0x3] }
 0x2c9   :  { %688 = vst.msk [vmem:[#allocation9 + $0x6] sm:$0x3] %vm52_vm0, %v686_v15  ;;  %v694_v48 = vpack.c.bf16 %v1789_v14, %v1789_v14 }
 0x2cb   :  { %1335 = vmatmul.msk.bf16.vlgmr.msra.gmra.mxu0 %vm95_vm2, %v694_v48  ;;  %1336 = vmatmul.msk.bf16.vlgmr.msra.gmra.mxu1 %vm95_vm2, %v694_v48 }
 0x2cc   :  { %1337 = vmatmul.msk.bf16.vlgmr.msra.gmra.mxu2 %vm95_vm2, %v694_v48  ;;  %1338 = vmatmul.msk.bf16.vlgmr.msra.gmra.mxu3 %vm95_vm2, %v694_v48 }
 0x2cd   :  { %986 = vmatpush.bf16.msra.mxu0 %v1640_v2  ;;  %1000 = vmatpush.bf16.msra.mxu1 %v1642_v3 }
 0x2ce   :  { %1028 = vmatpush.bf16.msra.mxu3 %v1644_v4  ;;  %1014 = vmatpush.bf16.msra.mxu2 %v1654_v8  ;;  %v693_v4 = vld [vmem:[#allocation4 + $0x26] sm:$0x3] }
 0x2d1   :  { %987 = vmatpush.bf16.msra.mxu0 %v1646_v5  ;;  %1001 = vmatpush.bf16.msra.mxu1 %v1650_v6 }
 0x2d2   :  { %1015 = vmatpush.bf16.msra.mxu2 %v1665_v11  ;;  %1029 = vmatpush.bf16.msra.mxu3 %v1657_v9 }
 0x348   :  { %v707_v17 = vpop.f32.mrf.mxu0  ;;  %v721_v18 = vpop.f32.mrf.mxu1 }
 0x349   :  { %v711_v19 = vadd.f32 %v707_v17, %v690_v55  ;;  %v725_v2 = vadd.f32 %v721_v18, %v691_v16  ;;  %v1511_v18 = vld [vmem:[#allocation7 + $0x8] sm:$0xff] }
 0x34b   :  { %v1339_v21 = vmul.f32 -1.442695, %v711_v19  ;;  %v1340_v3 = vmul.f32 -1.442695, %v725_v2  ;;  %v1512_v19 = vld [vmem:[#allocation7 + $0x18] sm:$0xff]  ;;  %v1514_v2 = vld [vmem:[#allocation7 + $0x28] sm:$0xff] }
 0x34d   :  { %1447 = vpow2.f32 %v1339_v21  ;;  %v1515_v21 = vld [vmem:[#allocation7] sm:$0xff] }
 0x34e   :  { %1449 = vpow2.f32 %v1340_v3  ;;  %v1516_v3 = vld [vmem:[#allocation7 + $0x10] sm:$0xff] }
 0x34f   :  { %v735_v8 = vpop.f32.mrf.mxu2  ;;  %v749_v22 = vpop.f32.mrf.mxu3 }
 0x350   :  { %v753_v5 = vadd.f32 %v749_v22, %v693_v4  ;;  %v709_v23 = vpop.f32.mrf.mxu0  ;;  %v723_v6 = vpop.f32.mrf.mxu1  ;;  %v739_v33 = vadd.f32 %v735_v8, %v692_v7  ;;  %v1517_v4 = vld [vmem:[#allocation7 + $0x20] sm:$0xff]  ;;  %v1518_v8 = vld [vmem:[#allocation7 + $0x30] sm:$0xff]  ;;  %v831_v22 = vld [vmem:[#allocation4 + $0x28] sm:$0x3] }
 0x352   :  { %v1341_v24 = vmul.f32 -1.442695, %v753_v5  ;;  %v832_v5 = vld [vmem:[#allocation4 + $0x2a] sm:$0x3] }
 0x353   :  { %v1448_v11 = vpop.eup %1447 }
 0x354   :  { %v1450_v25 = vpop.eup %1449  ;;  %v757_v9 = vadd.f32 1.0, %v1448_v11  ;;  %1451 = vpow2.f32 %v1341_v24 }
 0x355   :  { %v776_v26 = vadd.f32 1.0, %v1450_v25 }
 0x356   :  { %1453 = vrcp.f32 %v757_v9  ;;  %v769_v40 = vand.u32 2147483648, %v757_v9  ;;  %v767_v42 = vand.u32 2147483647, %v757_v9  ;;  %vm763_vm8 = vweird.f32 %v757_v9 }
 0x357   :  { %1455 = vrcp.f32 %v776_v26  ;;  %v737_v28 = vpop.f32.mrf.mxu2  ;;  %v751_v29 = vpop.f32.mrf.mxu3  ;;  %v788_v44 = vand.u32 2147483648, %v776_v26  ;;  %v786_v27 = vand.u32 2147483647, %v776_v26  ;;  %vm782_vm10 = vweird.f32 %v776_v26 }
 0x358   :  { %v770_v46 = vor.u32 1.1754944e-38, %v769_v40  ;;  %vm768_vm11 = vcmp.eq.f32.partialorder %v767_v42, 8.507059e+37  ;;  %v833_v40 = vld [vmem:[#allocation4 + $0x2c] sm:$0x3] }
 0x359   :  { %v789_v50 = vor.u32 1.1754944e-38, %v788_v44  ;;  %vm787_vm13 = vcmp.eq.f32.partialorder %v786_v27, 8.507059e+37 }
 0x35a   :  { %v1452_v30 = vpop.eup %1451 }
 0x35b   :  { %v796_v31 = vadd.f32 1.0, %v1452_v30 }
 0x35c   :  { %v1454_v32 = vpop.eup %1453 }
 0x35d   :  { %v1456_v34 = vpop.eup %1455  ;;  %v759_v35 = vmul.f32 %v1454_v32, %v757_v9  ;;  %1457 = vrcp.f32 %v796_v31  ;;  %vm764_vm6 = vweird.f32 %v1454_v32  ;;  %v808_v62 = vand.u32 2147483648, %v796_v31 }
 0x35e   :  { %v778_v37 = vmul.f32 %v1456_v34, %v776_v26  ;;  %1459 = vtanh.f32 %v739_v33  ;;  %vm783_vm7 = vweird.f32 %v1456_v34  ;;  %vm765_vm9 = vmor %vm763_vm8, %vm764_vm6  ;;  %vm802_vm1 = vweird.f32 %v796_v31  ;;  %v834_v26 = vld [vmem:[#allocation4 + $0x2e] sm:$0x3] }
 0x35f   :  { %v760_v38 = vsub.f32 1.0, %v759_v35  ;;  %vm784_vm12 = vmor %vm782_vm10, %vm783_vm7  ;;  %v806_v0 = vand.u32 2147483647, %v796_v31  ;;  %v809_v13 = vor.u32 1.1754944e-38, %v808_v62 }
 0x360   :  { %v779_v39 = vsub.f32 1.0, %v778_v37 }
 0x361   :  { %v761_v41 = vmul.f32 %v1454_v32, %v760_v38  ;;  %vm807_vm4 = vcmp.eq.f32.partialorder %v806_v0, 8.507059e+37 }
 0x362   :  { %v780_v20 = vmul.f32 %v1456_v34, %v779_v39 }
 0x363   :  { %v1458_v10 = vpop.eup %1457  ;;  %v762_v45 = vadd.f32 %v1454_v32, %v761_v41 }
 0x364   :  { %v798_v47 = vmul.f32 %v1458_v10, %v796_v31  ;;  %v781_v49 = vadd.f32 %v1456_v34, %v780_v20  ;;  %v1460_v51 = vpop.eup %1459  ;;  %vm803_vm15 = vweird.f32 %v1458_v10 }
 0x365   :  { %v766_v1 = vsel %vm765_vm9, %v1454_v32, %v762_v45  ;;  %vm804_vm3 = vmor %vm802_vm1, %vm803_vm15 }
 0x366   :  { %v771_v52 = vsel %vm768_vm11, %v770_v46, %v766_v1  ;;  %v799_v53 = vsub.f32 1.0, %v798_v47  ;;  %v785_v56 = vsel %vm784_vm12, %v1456_v34, %v781_v49 }
 0x367   :  { %v813_v36 = vmul.f32 %v1460_v51, %v771_v52  ;;  %v790_v43 = vsel %vm787_vm13, %v789_v50, %v785_v56 }
 0x368   :  { %v800_v57 = vmul.f32 %v1458_v10, %v799_v53  ;;  %v812_v58 = vmul.f32 %v790_v43, %v1785_v60 }
 0x36a   :  { %v814_v59 = vadd.f32 %v813_v36, %v812_v58  ;;  %v801_v61 = vadd.f32 %v1458_v10, %v800_v57 }
 0x36c   :  { %1461 = vtanh.f32 %v814_v59  ;;  %v1810_v63 = vsel %vm824_vm14, %v814_v59, %v1785_v60  ;;  %v805_v12 = vsel %vm804_vm3, %v1458_v10, %v801_v61 }
 0x36d   :  { %v810_v48 = vsel %vm807_vm4, %v809_v13, %v805_v12 }
 0x372   :  { %v1462_v15 = vpop.eup %1461 }
 0x373   :  { %v816_v55 = vmul.f32 %v1462_v15, %v810_v48  ;;  %v964_v48 = vpop.permute.xlu2 %963 }
 0x374   :  { %vm965_vm13 = vcmp.eq.s32.totalorder %v964_v48, 1 }
 0x375   :  { %v1814_v16 = vsel %vm824_vm14, %v816_v55, %v1789_v14  ;;  %v827_v17 = vsel %vm824_vm14, %v816_v55, 0.0  ;;  %v1513_v14 = vld [vmem:[#allocation7 + $0x38] sm:$0xff] }
 0x376   :  { %829 = vst.msk [vmem:[#allocation9 + $0x8] sm:$0x3] %vm52_vm0, %v827_v17  ;;  %v835_v60 = vpack.c.bf16 %v1814_v16, %v1814_v16 }
 0x378   :  { %1342 = vmatmul.msk.bf16.vlgmr.msrb.gmra.mxu0 %vm95_vm2, %v835_v60  ;;  %1343 = vmatmul.msk.bf16.vlgmr.msrb.gmra.mxu1 %vm95_vm2, %v835_v60 }
 0x379   :  { %1344 = vmatmul.msk.bf16.vlgmr.msrb.gmra.mxu2 %vm95_vm2, %v835_v60  ;;  %1345 = vmatmul.msk.bf16.vlgmr.msrb.gmra.mxu3 %vm95_vm2, %v835_v60 }
 0x37a   :  { %1127 = vmatpush.bf16.msrb.mxu0 %v1511_v18  ;;  %1141 = vmatpush.bf16.msrb.mxu1 %v1512_v19 }
 0x37b   :  { %1169 = vmatpush.bf16.msrb.mxu3 %v1513_v14  ;;  %1155 = vmatpush.bf16.msrb.mxu2 %v1514_v2 }
 0x37e   :  { %1128 = vmatpush.bf16.msrb.mxu0 %v1515_v21  ;;  %1142 = vmatpush.bf16.msrb.mxu1 %v1516_v3 }
 0x37f   :  { %1156 = vmatpush.bf16.msrb.mxu2 %v1517_v4  ;;  %1170 = vmatpush.bf16.msrb.mxu3 %v1518_v8 }
 0x3f5   :  { %v848_v23 = vpop.f32.mrf.mxu0  ;;  %v862_v6 = vpop.f32.mrf.mxu1 }
 0x3f6   :  { %v852_v24 = vadd.f32 %v848_v23, %v831_v22  ;;  %v866_v11 = vadd.f32 %v862_v6, %v832_v5  ;;  %v972_v6 = vld [vmem:[#allocation4 + $0x30] sm:$0x3] }
 0x3f8   :  { %v1346_v25 = vmul.f32 -1.442695, %v852_v24  ;;  %v1347_v9 = vmul.f32 -1.442695, %v866_v11  ;;  %v973_v24 = vld [vmem:[#allocation4 + $0x32] sm:$0x3] }
 0x3fa   :  { %1463 = vpow2.f32 %v1346_v25 }
 0x3fb   :  { %1465 = vpow2.f32 %v1347_v9 }
 0x3fc   :  { %v876_v28 = vpop.f32.mrf.mxu2  ;;  %v890_v29 = vpop.f32.mrf.mxu3 }
 0x3fd   :  { %v894_v7 = vadd.f32 %v890_v29, %v834_v26  ;;  %v850_v30 = vpop.f32.mrf.mxu0  ;;  %v864_v31 = vpop.f32.mrf.mxu1  ;;  %v880_v20 = vadd.f32 %v876_v28, %v833_v40  ;;  %v975_v29 = vld [vmem:[#allocation4 + $0x36] sm:$0x3] }
 0x3ff   :  { %v1348_v32 = vmul.f32 -1.442695, %v894_v7 }
 0x400   :  { %v1464_v33 = vpop.eup %1463 }
 0x401   :  { %v1466_v34 = vpop.eup %1465  ;;  %v898_v35 = vadd.f32 1.0, %v1464_v33  ;;  %1467 = vpow2.f32 %v1348_v32 }
 0x402   :  { %v917_v37 = vadd.f32 1.0, %v1466_v34 }
 0x403   :  { %1469 = vrcp.f32 %v898_v35  ;;  %v910_v49 = vand.u32 2147483648, %v898_v35  ;;  %v908_v51 = vand.u32 2147483647, %v898_v35  ;;  %vm904_vm7 = vweird.f32 %v898_v35 }
 0x404   :  { %1471 = vrcp.f32 %v917_v37  ;;  %v878_v38 = vpop.f32.mrf.mxu2  ;;  %v892_v39 = vpop.f32.mrf.mxu3  ;;  %v929_v1 = vand.u32 2147483648, %v917_v37  ;;  %v927_v53 = vand.u32 2147483647, %v917_v37  ;;  %vm923_vm8 = vweird.f32 %v917_v37 }
 0x405   :  { %v911_v36 = vor.u32 1.1754944e-38, %v910_v49  ;;  %vm909_vm11 = vcmp.eq.f32.partialorder %v908_v51, 8.507059e+37 }
 0x406   :  { %v930_v58 = vor.u32 1.1754944e-38, %v929_v1  ;;  %vm928_vm12 = vcmp.eq.f32.partialorder %v927_v53, 8.507059e+37 }
 0x407   :  { %v1468_v41 = vpop.eup %1467 }
 0x408   :  { %v937_v42 = vadd.f32 1.0, %v1468_v41 }
 0x409   :  { %v1470_v44 = vpop.eup %1469 }
 0x40a   :  { %v1472_v27 = vpop.eup %1471  ;;  %v900_v10 = vmul.f32 %v1470_v44, %v898_v35  ;;  %1473 = vrcp.f32 %v937_v42  ;;  %vm905_vm5 = vweird.f32 %v1470_v44  ;;  %v949_v19 = vand.u32 2147483648, %v937_v42 }
 0x40b   :  { %v919_v45 = vmul.f32 %v1472_v27, %v917_v37  ;;  %1475 = vtanh.f32 %v880_v20  ;;  %vm924_vm6 = vweird.f32 %v1472_v27  ;;  %vm906_vm9 = vmor %vm904_vm7, %vm905_vm5  ;;  %vm943_vm15 = vweird.f32 %v937_v42 }
 0x40c   :  { %v901_v46 = vsub.f32 1.0, %v900_v10  ;;  %vm925_vm10 = vmor %vm923_vm8, %vm924_vm6  ;;  %v947_v2 = vand.u32 2147483647, %v937_v42  ;;  %v950_v3 = vor.u32 1.1754944e-38, %v949_v19 }
 0x40d   :  { %v920_v47 = vsub.f32 1.0, %v919_v45 }
 0x40e   :  { %v902_v50 = vmul.f32 %v1470_v44, %v901_v46  ;;  %vm948_vm3 = vcmp.eq.f32.partialorder %v947_v2, 8.507059e+37 }
 0x40f   :  { %v921_v52 = vmul.f32 %v1472_v27, %v920_v47 }
 0x410   :  { %v1474_v54 = vpop.eup %1473  ;;  %v903_v56 = vadd.f32 %v1470_v44, %v902_v50 }
 0x411   :  { %v922_v43 = vadd.f32 %v1472_v27, %v921_v52  ;;  %v939_v57 = vmul.f32 %v1474_v54, %v937_v42  ;;  %v1476_v61 = vpop.eup %1475  ;;  %vm944_vm14 = vweird.f32 %v1474_v54  ;;  %v974_v42 = vld [vmem:[#allocation4 + $0x34] sm:$0x3] }
 0x412   :  { %v907_v59 = vsel %vm906_vm9, %v1470_v44, %v903_v56  ;;  %vm945_vm1 = vmor %vm943_vm15, %vm944_vm14 }
 0x413   :  { %v912_v62 = vsel %vm909_vm11, %v911_v36, %v907_v59  ;;  %v926_v0 = vsel %vm925_vm10, %v1472_v27, %v922_v43  ;;  %v940_v12 = vsub.f32 1.0, %v939_v57 }
 0x414   :  { %v931_v13 = vsel %vm928_vm12, %v930_v58, %v926_v0  ;;  %v954_v15 = vmul.f32 %v1476_v61, %v912_v62 }
 0x415   :  { %v953_v55 = vmul.f32 %v931_v13, %v1810_v63  ;;  %v941_v17 = vmul.f32 %v1474_v54, %v940_v12 }
 0x417   :  { %v955_v60 = vadd.f32 %v954_v15, %v953_v55  ;;  %v942_v18 = vadd.f32 %v1474_v54, %v941_v17  ;;  %v1105_v17 = vpop.permute.xlu0 %1104 }
 0x418   :  { %vm1106_vm12 = vcmp.eq.s32.totalorder %v1105_v17, 1 }
 0x419   :  { %1477 = vtanh.f32 %v955_v60  ;;  %v1827_v14 = vsel %vm965_vm13, %v955_v60, %v1810_v63  ;;  %v946_v21 = vsel %vm945_vm1, %v1474_v54, %v942_v18 }
 0x41a   :  { %v951_v8 = vsel %vm948_vm3, %v950_v3, %v946_v21 }
 0x41f   :  { %v1478_v4 = vpop.eup %1477 }
 0x420   :  { %v957_v22 = vmul.f32 %v1478_v4, %v951_v8 }
 0x422   :  { %v1831_v5 = vsel %vm965_vm13, %v957_v22, %v1814_v16  ;;  %v968_v23 = vsel %vm965_vm13, %v957_v22, 0.0 }
 0x423   :  { %970 = vst.msk [vmem:[#allocation9 + $0xa] sm:$0x3] %vm52_vm0, %v968_v23  ;;  %v976_v63 = vpack.c.bf16 %v1831_v5, %v1831_v5 }
 0x425   :  { %1349 = vmatmul.msk.bf16.vlgmr.msra.gmra.mxu0 %vm95_vm2, %v976_v63  ;;  %1350 = vmatmul.msk.bf16.vlgmr.msra.gmra.mxu1 %vm95_vm2, %v976_v63 }
 0x426   :  { %1351 = vmatmul.msk.bf16.vlgmr.msra.gmra.mxu2 %vm95_vm2, %v976_v63  ;;  %1352 = vmatmul.msk.bf16.vlgmr.msra.gmra.mxu3 %vm95_vm2, %v976_v63 }
 0x4a2   :  { %v989_v11 = vpop.f32.mrf.mxu0  ;;  %v1003_v16 = vpop.f32.mrf.mxu1 }
 0x4a3   :  { %v993_v25 = vadd.f32 %v989_v11, %v972_v6  ;;  %v1007_v9 = vadd.f32 %v1003_v16, %v973_v24  ;;  %v1113_v16 = vld [vmem:[#allocation4 + $0x38] sm:$0x3] }
 0x4a5   :  { %v1353_v26 = vmul.f32 -1.442695, %v993_v25  ;;  %v1354_v28 = vmul.f32 -1.442695, %v1007_v9  ;;  %v1114_v25 = vld [vmem:[#allocation4 + $0x3a] sm:$0x3] }
 0x4a7   :  { %1479 = vpow2.f32 %v1353_v26 }
 0x4a8   :  { %1481 = vpow2.f32 %v1354_v28 }
 0x4a9   :  { %v1017_v7 = vpop.f32.mrf.mxu2  ;;  %v1031_v30 = vpop.f32.mrf.mxu3 }
 0x4aa   :  { %v1035_v31 = vadd.f32 %v1031_v30, %v975_v29  ;;  %v991_v32 = vpop.f32.mrf.mxu0  ;;  %v1005_v33 = vpop.f32.mrf.mxu1  ;;  %v1021_v10 = vadd.f32 %v1017_v7, %v974_v42  ;;  %v1116_v30 = vld [vmem:[#allocation4 + $0x3e] sm:$0x3] }
 0x4ac   :  { %v1355_v34 = vmul.f32 -1.442695, %v1035_v31 }
 0x4ad   :  { %v1480_v35 = vpop.eup %1479 }
 0x4ae   :  { %v1482_v37 = vpop.eup %1481  ;;  %v1039_v38 = vadd.f32 1.0, %v1480_v35  ;;  %1483 = vpow2.f32 %v1355_v34 }
 0x4af   :  { %v1058_v39 = vadd.f32 1.0, %v1482_v37 }
 0x4b0   :  { %1485 = vrcp.f32 %v1039_v38  ;;  %v1051_v50 = vand.u32 2147483648, %v1039_v38  ;;  %v1049_v53 = vand.u32 2147483647, %v1039_v38  ;;  %vm1045_vm6 = vweird.f32 %v1039_v38 }
 0x4b1   :  { %1487 = vrcp.f32 %v1058_v39  ;;  %v1019_v40 = vpop.f32.mrf.mxu2  ;;  %v1033_v41 = vpop.f32.mrf.mxu3  ;;  %v1070_v51 = vand.u32 2147483648, %v1058_v39  ;;  %v1068_v56 = vand.u32 2147483647, %v1058_v39  ;;  %vm1064_vm7 = vweird.f32 %v1058_v39 }
 0x4b2   :  { %v1052_v57 = vor.u32 1.1754944e-38, %v1051_v50  ;;  %vm1050_vm10 = vcmp.eq.f32.partialorder %v1049_v53, 8.507059e+37 }
 0x4b3   :  { %v1071_v61 = vor.u32 1.1754944e-38, %v1070_v51  ;;  %vm1069_vm11 = vcmp.eq.f32.partialorder %v1068_v56, 8.507059e+37 }
 0x4b4   :  { %v1484_v44 = vpop.eup %1483 }
 0x4b5   :  { %v1078_v20 = vadd.f32 1.0, %v1484_v44 }
 0x4b6   :  { %v1486_v27 = vpop.eup %1485 }
 0x4b7   :  { %v1488_v45 = vpop.eup %1487  ;;  %v1041_v46 = vmul.f32 %v1486_v27, %v1039_v38  ;;  %1489 = vrcp.f32 %v1078_v20  ;;  %vm1046_vm4 = vweird.f32 %v1486_v27  ;;  %v1090_v21 = vand.u32 2147483648, %v1078_v20 }
 0x4b8   :  { %v1060_v47 = vmul.f32 %v1488_v45, %v1058_v39  ;;  %1491 = vtanh.f32 %v1021_v10  ;;  %vm1065_vm5 = vweird.f32 %v1488_v45  ;;  %vm1047_vm8 = vmor %vm1045_vm6, %vm1046_vm4  ;;  %vm1084_vm14 = vweird.f32 %v1078_v20 }
 0x4b9   :  { %v1042_v49 = vsub.f32 1.0, %v1041_v46  ;;  %vm1066_vm9 = vmor %vm1064_vm7, %vm1065_vm5  ;;  %v1088_v4 = vand.u32 2147483647, %v1078_v20  ;;  %v1091_v22 = vor.u32 1.1754944e-38, %v1090_v21 }
 0x4ba   :  { %v1061_v1 = vsub.f32 1.0, %v1060_v47 }
 0x4bb   :  { %v1043_v52 = vmul.f32 %v1486_v27, %v1042_v49  ;;  %vm1089_vm1 = vcmp.eq.f32.partialorder %v1088_v4, 8.507059e+37 }
 0x4bc   :  { %v1062_v54 = vmul.f32 %v1488_v45, %v1061_v1 }
 0x4bd   :  { %v1490_v36 = vpop.eup %1489  ;;  %v1044_v43 = vadd.f32 %v1486_v27, %v1043_v52 }
 0x4be   :  { %v1063_v58 = vadd.f32 %v1488_v45, %v1062_v54  ;;  %v1080_v59 = vmul.f32 %v1490_v36, %v1078_v20  ;;  %v1492_v0 = vpop.eup %1491  ;;  %vm1085_vm13 = vweird.f32 %v1490_v36  ;;  %v1115_v20 = vld [vmem:[#allocation4 + $0x3c] sm:$0x3] }
 0x4bf   :  { %v1048_v62 = vsel %vm1047_vm8, %v1486_v27, %v1044_v43  ;;  %vm1086_vm15 = vmor %vm1084_vm14, %vm1085_vm13 }
 0x4c0   :  { %v1053_v12 = vsel %vm1050_vm10, %v1052_v57, %v1048_v62  ;;  %v1067_v13 = vsel %vm1066_vm9, %v1488_v45, %v1063_v58  ;;  %v1081_v15 = vsub.f32 1.0, %v1080_v59 }
 0x4c1   :  { %v1072_v48 = vsel %vm1069_vm11, %v1071_v61, %v1067_v13  ;;  %v1095_v55 = vmul.f32 %v1492_v0, %v1053_v12 }
 0x4c2   :  { %v1094_v60 = vmul.f32 %v1072_v48, %v1827_v14  ;;  %v1082_v18 = vmul.f32 %v1490_v36, %v1081_v15 }
 0x4c4   :  { %v1096_v19 = vadd.f32 %v1095_v55, %v1094_v60  ;;  %v1083_v2 = vadd.f32 %v1490_v36, %v1082_v18  ;;  %v1246_v18 = vpop.permute.xlu1 %1245 }
 0x4c5   :  { %vm1247_vm10 = vcmp.eq.s32.totalorder %v1246_v18, 1 }
 0x4c6   :  { %1493 = vtanh.f32 %v1096_v19  ;;  %v1844_v3 = vsel %vm1106_vm12, %v1096_v19, %v1827_v14  ;;  %v1087_v8 = vsel %vm1086_vm15, %v1490_v36, %v1083_v2 }
 0x4c7   :  { %v1092_v63 = vsel %vm1089_vm1, %v1091_v22, %v1087_v8 }
 0x4cc   :  { %v1494_v23 = vpop.eup %1493 }
 0x4cd   :  { %v1098_v6 = vmul.f32 %v1494_v23, %v1092_v63 }
 0x4cf   :  { %v1848_v24 = vsel %vm1106_vm12, %v1098_v6, %v1831_v5  ;;  %v1109_v11 = vsel %vm1106_vm12, %v1098_v6, 0.0 }
 0x4d0   :  { %1111 = vst.msk [vmem:[#allocation9 + $0xc] sm:$0x3] %vm52_vm0, %v1109_v11  ;;  %v1117_v14 = vpack.c.bf16 %v1848_v24, %v1848_v24 }
 0x4d2   :  { %1356 = vmatmul.msk.bf16.vlgmr.msrb.gmra.mxu0 %vm95_vm2, %v1117_v14  ;;  %1357 = vmatmul.msk.bf16.vlgmr.msrb.gmra.mxu1 %vm95_vm2, %v1117_v14 }
 0x4d3   :  { %1358 = vmatmul.msk.bf16.vlgmr.msrb.gmra.mxu2 %vm95_vm2, %v1117_v14  ;;  %1359 = vmatmul.msk.bf16.vlgmr.msrb.gmra.mxu3 %vm95_vm2, %v1117_v14 }
 0x54f   :  { %v1130_v9 = vpop.f32.mrf.mxu0  ;;  %v1144_v5 = vpop.f32.mrf.mxu1 }
 0x550   :  { %v1134_v26 = vadd.f32 %v1130_v9, %v1113_v16  ;;  %v1148_v28 = vadd.f32 %v1144_v5, %v1114_v25 }
 0x552   :  { %v1360_v29 = vmul.f32 -1.442695, %v1134_v26  ;;  %v1361_v7 = vmul.f32 -1.442695, %v1148_v28 }
 0x554   :  { %1495 = vpow2.f32 %v1360_v29 }
 0x555   :  { %1497 = vpow2.f32 %v1361_v7 }
 0x556   :  { %v1158_v31 = vpop.f32.mrf.mxu2  ;;  %v1172_v32 = vpop.f32.mrf.mxu3 }
 0x557   :  { %v1176_v33 = vadd.f32 %v1172_v32, %v1116_v30  ;;  %v1132_v34 = vpop.f32.mrf.mxu0  ;;  %v1146_v35 = vpop.f32.mrf.mxu1  ;;  %v1162_v46 = vadd.f32 %v1158_v31, %v1115_v20 }
 0x559   :  { %v1362_v37 = vmul.f32 -1.442695, %v1176_v33 }
 0x55a   :  { %v1496_v38 = vpop.eup %1495 }
 0x55b   :  { %v1498_v39 = vpop.eup %1497  ;;  %v1180_v40 = vadd.f32 1.0, %v1496_v38  ;;  %1499 = vpow2.f32 %v1362_v37 }
 0x55c   :  { %v1199_v41 = vadd.f32 1.0, %v1498_v39 }
 0x55d   :  { %1501 = vrcp.f32 %v1180_v40  ;;  %v1192_v52 = vand.u32 2147483648, %v1180_v40  ;;  %v1190_v56 = vand.u32 2147483647, %v1180_v40  ;;  %vm1186_vm4 = vweird.f32 %v1180_v40 }
 0x55e   :  { %1503 = vrcp.f32 %v1199_v41  ;;  %v1160_v42 = vpop.f32.mrf.mxu2  ;;  %v1174_v44 = vpop.f32.mrf.mxu3  ;;  %v1211_v53 = vand.u32 2147483648, %v1199_v41  ;;  %v1209_v43 = vand.u32 2147483647, %v1199_v41  ;;  %vm1205_vm5 = vweird.f32 %v1199_v41 }
 0x55f   :  { %v1193_v59 = vor.u32 1.1754944e-38, %v1192_v52  ;;  %vm1191_vm8 = vcmp.eq.f32.partialorder %v1190_v56, 8.507059e+37 }
 0x560   :  { %v1212_v0 = vor.u32 1.1754944e-38, %v1211_v53  ;;  %vm1210_vm9 = vcmp.eq.f32.partialorder %v1209_v43, 8.507059e+37 }
 0x561   :  { %v1500_v27 = vpop.eup %1499 }
 0x562   :  { %v1219_v10 = vadd.f32 1.0, %v1500_v27 }
 0x563   :  { %v1502_v45 = vpop.eup %1501 }
 0x564   :  { %v1504_v47 = vpop.eup %1503  ;;  %v1182_v49 = vmul.f32 %v1502_v45, %v1180_v40  ;;  %1505 = vrcp.f32 %v1219_v10  ;;  %vm1187_vm2 = vweird.f32 %v1502_v45  ;;  %v1231_v22 = vand.u32 2147483648, %v1219_v10 }
 0x565   :  { %v1201_v1 = vmul.f32 %v1504_v47, %v1199_v41  ;;  %1507 = vtanh.f32 %v1162_v46  ;;  %vm1206_vm3 = vweird.f32 %v1504_v47  ;;  %vm1188_vm6 = vmor %vm1186_vm4, %vm1187_vm2  ;;  %vm1225_vm12 = vweird.f32 %v1219_v10 }
 0x566   :  { %v1183_v50 = vsub.f32 1.0, %v1182_v49  ;;  %vm1207_vm7 = vmor %vm1205_vm5, %vm1206_vm3  ;;  %v1229_v23 = vand.u32 2147483647, %v1219_v10  ;;  %v1232_v6 = vor.u32 1.1754944e-38, %v1231_v22 }
 0x567   :  { %v1202_v51 = vsub.f32 1.0, %v1201_v1 }
 0x568   :  { %v1184_v54 = vmul.f32 %v1502_v45, %v1183_v50  ;;  %vm1230_vm14 = vcmp.eq.f32.partialorder %v1229_v23, 8.507059e+37 }
 0x569   :  { %v1203_v36 = vmul.f32 %v1504_v47, %v1202_v51 }
 0x56a   :  { %v1506_v57 = vpop.eup %1505  ;;  %v1185_v58 = vadd.f32 %v1502_v45, %v1184_v54 }
 0x56b   :  { %v1204_v61 = vadd.f32 %v1504_v47, %v1203_v36  ;;  %v1221_v62 = vmul.f32 %v1506_v57, %v1219_v10  ;;  %v1508_v13 = vpop.eup %1507  ;;  %vm1226_vm11 = vweird.f32 %v1506_v57 }
 0x56c   :  { %v1189_v12 = vsel %vm1188_vm6, %v1502_v45, %v1185_v58  ;;  %vm1227_vm13 = vmor %vm1225_vm12, %vm1226_vm11 }
 0x56d   :  { %v1194_v15 = vsel %vm1191_vm8, %v1193_v59, %v1189_v12  ;;  %v1208_v48 = vsel %vm1207_vm7, %v1504_v47, %v1204_v61  ;;  %v1222_v55 = vsub.f32 1.0, %v1221_v62 }
 0x56e   :  { %v1213_v17 = vsel %vm1210_vm9, %v1212_v0, %v1208_v48  ;;  %v1236_v60 = vmul.f32 %v1508_v13, %v1194_v15 }
 0x56f   :  { %v1235_v19 = vmul.f32 %v1213_v17, %v1844_v3  ;;  %v1223_v2 = vmul.f32 %v1506_v57, %v1222_v55 }
 0x571   :  { %v1237_v21 = vadd.f32 %v1236_v60, %v1235_v19  ;;  %v1224_v4 = vadd.f32 %v1506_v57, %v1223_v2 }
 0x573   :  { %1509 = vtanh.f32 %v1237_v21  ;;  %v1249_v8 = vsel %vm1247_vm10, %v1237_v21, %v1844_v3  ;;  %v1228_v63 = vsel %vm1227_vm13, %v1506_v57, %v1224_v4 }
 0x574   :  { %1254 = vst.msk [vmem:[#allocation3] sm:$0x3] %vm52_vm0, %v1249_v8  ;;  %v1233_v14 = vsel %vm1230_vm14, %v1232_v6, %v1228_v63 }
 0x579   :  { %v1510_v11 = vpop.eup %1509 }
 0x57a   :  { %v1239_v16 = vmul.f32 %v1510_v11, %v1233_v14 }
 0x57c   :  { %v1248_v3 = vsel %vm1247_vm10, %v1239_v16, %v1848_v24  ;;  %v1250_v25 = vsel %vm1247_vm10, %v1239_v16, 0.0 }
 0x57d   :  { %1252 = vst.msk [vmem:[#allocation9 + $0xe] sm:$0x3] %vm52_vm0, %v1250_v25 }
 0x57e   :  { %1253 = vst.msk [vmem:[#allocation2] sm:$0x3] %vm52_vm0, %v1248_v3  ;;  %1267 = dma.vmem_to_hbm [thread:$0]  %s1260_s26, 256, %s1262_s29, [#allocation6], %s1598_s20, %s1598_s20, %s1599_s21  }
 0x57f   :  { %1595 = dma.done.wait [#allocation6], 256  }
 0x580   :  { %1596 = vsyncadd [#allocation6], 4294967040 }
 0x581   :  { %1272 = vsyncpa [#allocation5], 1 }
 0x582   :  { %1273 = vsyncpa [#allocation8], 1 }
 0x583   :  { %1274 = vsyncpa [#allocation6], 1 }

</bundles_post_ra>
